<compile_context>
chip_gen: v7x
topology: tpu7x:2x2x1
jax: 0.10.0
libtpu: 0.0.40
codegen_flags: <defaults>
</compile_context>

<pallas_src>
import jax
import jax.numpy as jnp
import numpy as np
from jax.experimental import pallas as pl
from jax.experimental.pallas import tpu as pltpu


_BIG = 1.0e30          # acts as +inf for the clipped-window min
_STAT_ROWS = 8         # rows: tp, p_sum, y_cnt, tp_b, xb_sum, yb_cnt, ce_sum, pad


def _erode3x3(a, ops):
    """3x3 min-pool of a 2-D map, window clipped to valid pixels.

    Equivalent to torch's `-MaxPool2d(3, stride=1, padding=1)(-a)` (implicit
    -inf padding).  Neighbor shifts are exact 0/1 matmuls (values moved
    unchanged, runs on the otherwise idle MXU); out-of-range neighbors are
    disabled by adding +_BIG on the (pre-built) border masks before the min.
    The 3x3 min is separable: vertical 3-min, then horizontal 3-min.
    """
    up_m, dn_m, lf_m, rt_m, top_bad, bot_bad, left_bad, right_bad = ops
    up = jnp.dot(up_m, a, preferred_element_type=jnp.float32) + top_bad    # a[i-1, :]
    dn = jnp.dot(dn_m, a, preferred_element_type=jnp.float32) + bot_bad    # a[i+1, :]
    v = jnp.minimum(a, jnp.minimum(up, dn))
    lf = jnp.dot(v, lf_m, preferred_element_type=jnp.float32) + left_bad   # v[:, j-1]
    rt = jnp.dot(v, rt_m, preferred_element_type=jnp.float32) + right_bad  # v[:, j+1]
    return jnp.minimum(v, jnp.minimum(lf, rt))


def _boundary(a, ops):
    """mask_to_boundary: a - erode(erode(a)) with two 3x3 min-pools."""
    return a - _erode3x3(_erode3x3(a, ops), ops)


def _dc_ce_biou_stats_kernel(x_ref, y_ref, out_ref):
    # x_ref block: (1, C, H, W) logits; y_ref block: (1, 1, H, W) int32 label map.
    _, C, H, W = x_ref.shape
    _, n_rows, n_lanes = out_ref.shape
    y0 = y_ref[0, 0]                                           # (H, W) int32

    # Per-channel logits (C is small & static -> unrolled, all ops stay 2-D).
    xs = [x_ref[0, c].astype(jnp.float32) for c in range(C)]

    # ---- fused softmax over channels + cross-entropy partial sum ------------
    m = xs[0]
    for c in range(1, C):
        m = jnp.maximum(m, xs[c])
    es = [jnp.exp(xc - m) for xc in xs]
    se = es[0]
    sel = jnp.where(y0 == 0, xs[0], 0.0)                       # logit at target label
    for c in range(1, C):
        se = se + es[c]
        sel = sel + jnp.where(y0 == c, xs[c], 0.0)
    inv_se = 1.0 / se
    ps = [ec * inv_se for ec in es]                            # softmax probabilities
    ce_sum = jnp.sum(m + jnp.log(se) - sel)                    # sum_px (logsumexp - logit[y])

    # ---- shift operators + border masks (built ONCE, reused by all erosions)-
    ri = jax.lax.broadcasted_iota(jnp.int32, (H, W), 0)
    ci = jax.lax.broadcasted_iota(jnp.int32, (H, W), 1)
    rH = jax.lax.broadcasted_iota(jnp.int32, (H, H), 0)
    cH = jax.lax.broadcasted_iota(jnp.int32, (H, H), 1)
    rW = jax.lax.broadcasted_iota(jnp.int32, (W, W), 0)
    cW = jax.lax.broadcasted_iota(jnp.int32, (W, W), 1)
    up_m = (rH == cH + 1).astype(jnp.float32)                  # up_m @ a -> a[i-1, :]
    dn_m = (cH == rH + 1).astype(jnp.float32)                  # dn_m @ a -> a[i+1, :]
    lf_m = (rW + 1 == cW).astype(jnp.float32)                  # a @ lf_m -> a[:, j-1]
    rt_m = (rW == cW + 1).astype(jnp.float32)                  # a @ rt_m -> a[:, j+1]
    top_bad = jnp.where(ri == 0, _BIG, 0.0)
    bot_bad = jnp.where(ri == H - 1, _BIG, 0.0)
    left_bad = jnp.where(ci == 0, _BIG, 0.0)
    right_bad = jnp.where(ci == W - 1, _BIG, 0.0)
    ops = (up_m, dn_m, lf_m, rt_m, top_bad, bot_bad, left_bad, right_bad)

    # ---- boundary of the label map (shared across channels) -----------------
    # Matches torch: y_boundary = y - erode(erode(y)) (float) then .long() for
    # the scatter -> one-hot of the int boundary values.
    yb = _boundary(y0.astype(jnp.float32), ops).astype(jnp.int32)          # (H, W)

    # ---- per-channel statistics (algebraically reduced) ---------------------
    # rows: 0 tp, 1 sum(p), 2 count(onehot), 3 tp_boundary, 4 sum(xb), 5 count(yb_onehot)
    stat_rows = [[], [], [], [], [], []]
    for c in range(C):
        onehot = (y0 == c).astype(jnp.float32)
        p_c = ps[c]
        stat_rows[0].append(jnp.sum(p_c * onehot))
        stat_rows[1].append(jnp.sum(p_c))
        stat_rows[2].append(jnp.sum(onehot))
        xb_c = _boundary(p_c, ops)
        yb_onehot = (yb == c).astype(jnp.float32)
        stat_rows[3].append(jnp.sum(xb_c * yb_onehot))
        stat_rows[4].append(jnp.sum(xb_c))
        stat_rows[5].append(jnp.sum(yb_onehot))

    # ---- pack everything into one lane-dense (8, n_lanes) block, store once -
    rr = jax.lax.broadcasted_iota(jnp.int32, (n_rows, n_lanes), 0)
    cc = jax.lax.broadcasted_iota(jnp.int32, (n_rows, n_lanes), 1)
    blk = jnp.zeros((n_rows, n_lanes), jnp.float32)
    for r, row in enumerate(stat_rows):
        for c, v in enumerate(row):
            blk = blk + jnp.where((rr == r) & (cc == c), v, 0.0)
    blk = blk + jnp.where((rr == len(stat_rows)) & (cc == 0), ce_sum, 0.0)
    out_ref[0] = blk


def _dc_ce_biou_stats(net_output, target_labels):
    """Fused per-batch statistics: (B, 8, C) float32 (see kernel row layout)."""
    B, C, H, W = net_output.shape
    labels = target_labels.astype(jnp.int32)
    stat_lanes = max(128, ((C + 127) // 128) * 128)   # lane-dense output slab
    stats = pl.pallas_call(
        _dc_ce_biou_stats_kernel,
        out_shape=jax.ShapeDtypeStruct((B, _STAT_ROWS, stat_lanes), jnp.float32),
        grid_spec=pltpu.PrefetchScalarGridSpec(
            num_scalar_prefetch=0,
            grid=(B,),
            in_specs=[
                pl.BlockSpec((1, C, H, W), lambda b: (b, 0, 0, 0)),
                pl.BlockSpec((1, 1, H, W), lambda b: (b, 0, 0, 0)),
            ],
            out_specs=pl.BlockSpec((1, _STAT_ROWS, stat_lanes), lambda b: (b, 0, 0)),
        ),
        compiler_params=pltpu.CompilerParams(
            dimension_semantics=("parallel",),
            vmem_limit_bytes=32 * 1024 * 1024,
        ),
    )(net_output, labels)
    return stats[:, :, :C]


def _neg_soft_dice(tp, ssum, cnt, *, smooth, batch_dice, do_bg):
    """-mean( (2*tp + s) / (2*tp + fp + fn + s + 1e-8) ) with fp/fn derived."""
    if batch_dice:
        tp, ssum, cnt = tp.sum(0), ssum.sum(0), cnt.sum(0)
    nominator = 2.0 * tp + smooth
    denominator = ssum + cnt + smooth            # == 2*tp + fp + fn + smooth
    dc = nominator / (denominator + 1e-8)
    if not do_bg:
        dc = dc[1:] if batch_dice else dc[:, 1:]
    return -jnp.mean(dc)


def dc_ce_biou_loss(net_output, target, *, batch_dice=False, do_bg=True, smooth=1.0,
                    weight_ce=1.0, weight_dice=1.0, weight_biou=1.0, log_dice=False):
    """Forward of DC_CE_BIoU_loss: weight_ce*CE + weight_dice*SoftDice + weight_BIoU*BIoUDice."""
    B, C, H, W = net_output.shape
    if target.ndim == net_output.ndim - 1:
        target = target[:, None]

    stats = _dc_ce_biou_stats(net_output, target)              # (B, 8, C)
    tp, psum, ycnt = stats[:, 0], stats[:, 1], stats[:, 2]
    tpb, xbsum, ybcnt = stats[:, 3], stats[:, 4], stats[:, 5]
    ce_sum = stats[:, 6, 0]                                    # (B,)

    dc_loss = _neg_soft_dice(tp, psum, ycnt, smooth=smooth,
                             batch_dice=batch_dice, do_bg=do_bg)
    if log_dice:
        dc_loss = -jnp.log(-dc_loss)
    bl_loss = _neg_soft_dice(tpb, xbsum, ybcnt, smooth=smooth,
                             batch_dice=batch_dice, do_bg=do_bg)
    ce_loss = jnp.sum(ce_sum) / (B * H * W)

    return weight_ce * ce_loss + weight_dice * dc_loss + weight_biou * bl_loss


def _reference_loss(x, y, *, batch_dice=False, do_bg=True, smooth=1.0,
                    weight_ce=1.0, weight_dice=1.0, weight_biou=1.0, log_dice=False):
    """Pure-JAX re-implementation of the PyTorch module (B == 2, no ignore_label)."""
    x = x.astype(jnp.float32)
    y = y.astype(jnp.int32)
    B, C, H, W = x.shape
    axes = (0, 2, 3) if batch_dice else (2, 3)

    def neg_dice(pred, onehot):
        tp = jnp.sum(pred * onehot, axis=axes)
        fp = jnp.sum(pred * (1.0 - onehot), axis=axes)
        fn = jnp.sum((1.0 - pred) * onehot, axis=axes)
        dc = (2.0 * tp + smooth) / (2.0 * tp + fp + fn + smooth + 1e-8)
        if not do_bg:
            dc = dc[1:] if batch_dice else dc[:, 1:]
        return -jnp.mean(dc)

    def erode(m):
        nd = m.ndim
        return jax.lax.reduce_window(
            m, jnp.inf, jax.lax.min,
            (1,) * (nd - 2) + (3, 3), (1,) * nd,
            [(0, 0)] * (nd - 2) + [(1, 1), (1, 1)])

    def boundary(m):
        return m - erode(erode(m))

    p = jax.nn.softmax(x, axis=1)
    onehot = jax.nn.one_hot(y[:, 0], C, axis=1, dtype=jnp.float32)
    dc_loss = neg_dice(p, onehot)
    if log_dice:
        dc_loss = -jnp.log(-dc_loss)

    xb = boundary(p)
    yb = boundary(y[:, 0].astype(jnp.float32)).astype(jnp.int32)
    yb_onehot = jax.nn.one_hot(yb, C, axis=1, dtype=jnp.float32)
    bl_loss = neg_dice(xb, yb_onehot)

    logp = jax.nn.log_softmax(x, axis=1)
    ce_loss = -jnp.mean(jnp.take_along_axis(logp, y, axis=1))
    return weight_ce * ce_loss + weight_dice * dc_loss + weight_biou * bl_loss


if __name__ == "__main__":
    key = jax.random.PRNGKey(0)
    kx, ky = jax.random.split(key)

    # B must be 2 to match the reference module's hard-coded boundary loop.
    B, C, H, W = 2, 4, 16, 16
    net_output = jax.random.normal(kx, (B, C, H, W), dtype=jnp.float32)    # raw logits
    target = jax.random.randint(ky, (B, 1, H, W), 0, C, dtype=jnp.int32)   # label map

    loss = jax.jit(dc_ce_biou_loss)(net_output, target)
    loss = jax.block_until_ready(loss)
    assert bool(jnp.isfinite(loss)), "loss is not finite"

    ref = jax.block_until_ready(_reference_loss(net_output, target))
    np.testing.assert_allclose(np.asarray(loss), np.asarray(ref), rtol=2e-2, atol=5e-3)

    print("KERNEL_OK")
</pallas_src>

<mosaic_0001>
module attributes {stable_mosaic.version = 11 : i64} {
  func.func @_dc_ce_biou_stats_kernel(%arg0: i32, %arg1: memref<1x4x16x16xf32, #tpu.memory_space<vmem>>, %arg2: memref<1x1x16x16xi32, #tpu.memory_space<vmem>>, %arg3: memref<1x8x128xf32, #tpu.memory_space<vmem>>) attributes {dimension_semantics = [#tpu.dimension_semantics<parallel>], iteration_bounds = array<i64: 2>, scalar_prefetch = 0 : i64, scratch_operands = 0 : i64, tpu.core_type = #tpu.core_type<tc>, window_params = [{transform_indices = @transform_0, window_bounds = array<i64: 1, 4, 16, 16>}, {transform_indices = @transform_1, window_bounds = array<i64: 1, 1, 16, 16>}, {transform_indices = @transform_2, window_bounds = array<i64: 1, 8, 128>}]} {
    %c0 = arith.constant 0 : index
    %c0_0 = arith.constant 0 : index
    %c0_1 = arith.constant 0 : index
    %c0_2 = arith.constant 0 : index
    %0 = vector.load %arg2[%c0, %c0_0, %c0_1, %c0_2] : memref<1x1x16x16xi32, #tpu.memory_space<vmem>>, vector<1x1x16x16xi32>
    %1 = vector.shape_cast %0 : vector<1x1x16x16xi32> to vector<16x16xi32>
    %c0_3 = arith.constant 0 : index
    %c0_4 = arith.constant 0 : index
    %c0_5 = arith.constant 0 : index
    %c0_6 = arith.constant 0 : index
    %2 = vector.load %arg1[%c0_3, %c0_4, %c0_5, %c0_6] : memref<1x4x16x16xf32, #tpu.memory_space<vmem>>, vector<1x1x16x16xf32>
    %3 = vector.shape_cast %2 : vector<1x1x16x16xf32> to vector<16x16xf32>
    %c0_7 = arith.constant 0 : index
    %c1 = arith.constant 1 : index
    %c0_8 = arith.constant 0 : index
    %c0_9 = arith.constant 0 : index
    %4 = vector.load %arg1[%c0_7, %c1, %c0_8, %c0_9] : memref<1x4x16x16xf32, #tpu.memory_space<vmem>>, vector<1x1x16x16xf32>
    %5 = vector.shape_cast %4 : vector<1x1x16x16xf32> to vector<16x16xf32>
    %c0_10 = arith.constant 0 : index
    %c2 = arith.constant 2 : index
    %c0_11 = arith.constant 0 : index
    %c0_12 = arith.constant 0 : index
    %6 = vector.load %arg1[%c0_10, %c2, %c0_11, %c0_12] : memref<1x4x16x16xf32, #tpu.memory_space<vmem>>, vector<1x1x16x16xf32>
    %7 = vector.shape_cast %6 : vector<1x1x16x16xf32> to vector<16x16xf32>
    %c0_13 = arith.constant 0 : index
    %c3 = arith.constant 3 : index
    %c0_14 = arith.constant 0 : index
    %c0_15 = arith.constant 0 : index
    %8 = vector.load %arg1[%c0_13, %c3, %c0_14, %c0_15] : memref<1x4x16x16xf32, #tpu.memory_space<vmem>>, vector<1x1x16x16xf32>
    %9 = vector.shape_cast %8 : vector<1x1x16x16xf32> to vector<16x16xf32>
    %10 = arith.maximumf %3, %5 : vector<16x16xf32>
    %11 = arith.maximumf %10, %7 : vector<16x16xf32>
    %12 = arith.maximumf %11, %9 : vector<16x16xf32>
    %13 = arith.subf %3, %12 : vector<16x16xf32>
    %14 = math.exp %13 : vector<16x16xf32>
    %15 = arith.subf %5, %12 : vector<16x16xf32>
    %16 = math.exp %15 : vector<16x16xf32>
    %17 = arith.subf %7, %12 : vector<16x16xf32>
    %18 = math.exp %17 : vector<16x16xf32>
    %19 = arith.subf %9, %12 : vector<16x16xf32>
    %20 = math.exp %19 : vector<16x16xf32>
    %c0_i32 = arith.constant 0 : i32
    %21 = vector.broadcast %c0_i32 : i32 to vector<16x16xi32>
    %22 = arith.cmpi eq, %1, %21 : vector<16x16xi32>
    %cst = arith.constant 0.000000e+00 : f32
    %23 = vector.broadcast %cst : f32 to vector<16x16xf32>
    %24 = arith.select %22, %3, %23 : vector<16x16xi1>, vector<16x16xf32>
    %25 = arith.addf %14, %16 : vector<16x16xf32>
    %c1_i32 = arith.constant 1 : i32
    %26 = vector.broadcast %c1_i32 : i32 to vector<16x16xi32>
    %27 = arith.cmpi eq, %1, %26 : vector<16x16xi32>
    %cst_16 = arith.constant 0.000000e+00 : f32
    %28 = vector.broadcast %cst_16 : f32 to vector<16x16xf32>
    %29 = arith.select %27, %5, %28 : vector<16x16xi1>, vector<16x16xf32>
    %30 = arith.addf %24, %29 : vector<16x16xf32>
    %31 = arith.addf %25, %18 : vector<16x16xf32>
    %c2_i32 = arith.constant 2 : i32
    %32 = vector.broadcast %c2_i32 : i32 to vector<16x16xi32>
    %33 = arith.cmpi eq, %1, %32 : vector<16x16xi32>
    %cst_17 = arith.constant 0.000000e+00 : f32
    %34 = vector.broadcast %cst_17 : f32 to vector<16x16xf32>
    %35 = arith.select %33, %7, %34 : vector<16x16xi1>, vector<16x16xf32>
    %36 = arith.addf %30, %35 : vector<16x16xf32>
    %37 = arith.addf %31, %20 : vector<16x16xf32>
    %c3_i32 = arith.constant 3 : i32
    %38 = vector.broadcast %c3_i32 : i32 to vector<16x16xi32>
    %39 = arith.cmpi eq, %1, %38 : vector<16x16xi32>
    %cst_18 = arith.constant 0.000000e+00 : f32
    %40 = vector.broadcast %cst_18 : f32 to vector<16x16xf32>
    %41 = arith.select %39, %9, %40 : vector<16x16xi1>, vector<16x16xf32>
    %42 = arith.addf %36, %41 : vector<16x16xf32>
    %cst_19 = arith.constant 1.000000e+00 : f32
    %43 = vector.broadcast %cst_19 : f32 to vector<16x16xf32>
    %44 = arith.divf %43, %37 : vector<16x16xf32>
    %45 = arith.mulf %14, %44 : vector<16x16xf32>
    %46 = arith.mulf %16, %44 : vector<16x16xf32>
    %47 = arith.mulf %18, %44 : vector<16x16xf32>
    %48 = arith.mulf %20, %44 : vector<16x16xf32>
    %49 = math.log %37 : vector<16x16xf32>
    %50 = arith.addf %12, %49 : vector<16x16xf32>
    %51 = arith.subf %50, %42 : vector<16x16xf32>
    %52 = vector.shape_cast %51 : vector<16x16xf32> to vector<1x16x16xf32>
    %cst_20 = arith.constant dense<0.000000e+00> : vector<1xf32>
    %53 = vector.multi_reduction <add>, %52, %cst_20 [1, 2] : vector<1x16x16xf32> to vector<1xf32>
    %54 = vector.shape_cast %53 : vector<1xf32> to vector<1x1x1xf32>
    %55 = vector.extract %54[0, 0, 0] : f32 from vector<1x1x1xf32>
    %56 = tpu.iota {dimensions = array<i32: 0>} : vector<16x16xi32>
    %57 = tpu.iota {dimensions = array<i32: 1>} : vector<16x16xi32>
    %58 = tpu.iota {dimensions = array<i32: 0>} : vector<16x16xi32>
    %59 = tpu.iota {dimensions = array<i32: 1>} : vector<16x16xi32>
    %60 = tpu.iota {dimensions = array<i32: 0>} : vector<16x16xi32>
    %61 = tpu.iota {dimensions = array<i32: 1>} : vector<16x16xi32>
    %c1_i32_21 = arith.constant 1 : i32
    %62 = vector.broadcast %c1_i32_21 : i32 to vector<16x16xi32>
    %63 = arith.addi %59, %62 : vector<16x16xi32>
    %64 = arith.cmpi eq, %58, %63 : vector<16x16xi32>
    %65 = arith.extui %64 : vector<16x16xi1> to vector<16x16xi32>
    %66 = arith.sitofp %65 : vector<16x16xi32> to vector<16x16xf32>
    %c1_i32_22 = arith.constant 1 : i32
    %67 = vector.broadcast %c1_i32_22 : i32 to vector<16x16xi32>
    %68 = arith.addi %58, %67 : vector<16x16xi32>
    %69 = arith.cmpi eq, %59, %68 : vector<16x16xi32>
    %70 = arith.extui %69 : vector<16x16xi1> to vector<16x16xi32>
    %71 = arith.sitofp %70 : vector<16x16xi32> to vector<16x16xf32>
    %c1_i32_23 = arith.constant 1 : i32
    %72 = vector.broadcast %c1_i32_23 : i32 to vector<16x16xi32>
    %73 = arith.addi %60, %72 : vector<16x16xi32>
    %74 = arith.cmpi eq, %73, %61 : vector<16x16xi32>
    %75 = arith.extui %74 : vector<16x16xi1> to vector<16x16xi32>
    %76 = arith.sitofp %75 : vector<16x16xi32> to vector<16x16xf32>
    %c1_i32_24 = arith.constant 1 : i32
    %77 = vector.broadcast %c1_i32_24 : i32 to vector<16x16xi32>
    %78 = arith.addi %61, %77 : vector<16x16xi32>
    %79 = arith.cmpi eq, %60, %78 : vector<16x16xi32>
    %80 = arith.extui %79 : vector<16x16xi1> to vector<16x16xi32>
    %81 = arith.sitofp %80 : vector<16x16xi32> to vector<16x16xf32>
    %c0_i32_25 = arith.constant 0 : i32
    %82 = vector.broadcast %c0_i32_25 : i32 to vector<16x16xi32>
    %83 = arith.cmpi eq, %56, %82 : vector<16x16xi32>
    %cst_26 = arith.constant 1.000000e+30 : f32
    %cst_27 = arith.constant 0.000000e+00 : f32
    %84 = vector.broadcast %cst_26 : f32 to vector<16x16xf32>
    %85 = vector.broadcast %cst_27 : f32 to vector<16x16xf32>
    %86 = arith.select %83, %84, %85 : vector<16x16xi1>, vector<16x16xf32>
    %c15_i32 = arith.constant 15 : i32
    %87 = vector.broadcast %c15_i32 : i32 to vector<16x16xi32>
    %88 = arith.cmpi eq, %56, %87 : vector<16x16xi32>
    %cst_28 = arith.constant 1.000000e+30 : f32
    %cst_29 = arith.constant 0.000000e+00 : f32
    %89 = vector.broadcast %cst_28 : f32 to vector<16x16xf32>
    %90 = vector.broadcast %cst_29 : f32 to vector<16x16xf32>
    %91 = arith.select %88, %89, %90 : vector<16x16xi1>, vector<16x16xf32>
    %c0_i32_30 = arith.constant 0 : i32
    %92 = vector.broadcast %c0_i32_30 : i32 to vector<16x16xi32>
    %93 = arith.cmpi eq, %57, %92 : vector<16x16xi32>
    %cst_31 = arith.constant 1.000000e+30 : f32
    %cst_32 = arith.constant 0.000000e+00 : f32
    %94 = vector.broadcast %cst_31 : f32 to vector<16x16xf32>
    %95 = vector.broadcast %cst_32 : f32 to vector<16x16xf32>
    %96 = arith.select %93, %94, %95 : vector<16x16xi1>, vector<16x16xf32>
    %c15_i32_33 = arith.constant 15 : i32
    %97 = vector.broadcast %c15_i32_33 : i32 to vector<16x16xi32>
    %98 = arith.cmpi eq, %57, %97 : vector<16x16xi32>
    %cst_34 = arith.constant 1.000000e+30 : f32
    %cst_35 = arith.constant 0.000000e+00 : f32
    %99 = vector.broadcast %cst_34 : f32 to vector<16x16xf32>
    %100 = vector.broadcast %cst_35 : f32 to vector<16x16xf32>
    %101 = arith.select %98, %99, %100 : vector<16x16xi1>, vector<16x16xf32>
    %102 = arith.sitofp %1 : vector<16x16xi32> to vector<16x16xf32>
    %cst_36 = arith.constant dense<0.000000e+00> : vector<16x16xf32>
    %103 = tpu.matmul %66, %102, %cst_36 {dimension_numbers = #tpu.dot_dimension_numbers<[1], [0], [0], [1], [0, 0, 1, 1], [], []>} : vector<16x16xf32>, vector<16x16xf32>, vector<16x16xf32> -> vector<16x16xf32>
    %104 = arith.addf %103, %86 : vector<16x16xf32>
    %cst_37 = arith.constant dense<0.000000e+00> : vector<16x16xf32>
    %105 = tpu.matmul %71, %102, %cst_37 {dimension_numbers = #tpu.dot_dimension_numbers<[1], [0], [0], [1], [0, 0, 1, 1], [], []>} : vector<16x16xf32>, vector<16x16xf32>, vector<16x16xf32> -> vector<16x16xf32>
    %106 = arith.addf %105, %91 : vector<16x16xf32>
    %107 = arith.minimumf %104, %106 : vector<16x16xf32>
    %108 = arith.minimumf %102, %107 : vector<16x16xf32>
    %cst_38 = arith.constant dense<0.000000e+00> : vector<16x16xf32>
    %109 = tpu.matmul %108, %76, %cst_38 {dimension_numbers = #tpu.dot_dimension_numbers<[1], [0], [0], [1], [0, 0, 1, 1], [], []>} : vector<16x16xf32>, vector<16x16xf32>, vector<16x16xf32> -> vector<16x16xf32>
    %110 = arith.addf %109, %96 : vector<16x16xf32>
    %cst_39 = arith.constant dense<0.000000e+00> : vector<16x16xf32>
    %111 = tpu.matmul %108, %81, %cst_39 {dimension_numbers = #tpu.dot_dimension_numbers<[1], [0], [0], [1], [0, 0, 1, 1], [], []>} : vector<16x16xf32>, vector<16x16xf32>, vector<16x16xf32> -> vector<16x16xf32>
    %112 = arith.addf %111, %101 : vector<16x16xf32>
    %113 = arith.minimumf %110, %112 : vector<16x16xf32>
    %114 = arith.minimumf %108, %113 : vector<16x16xf32>
    %cst_40 = arith.constant dense<0.000000e+00> : vector<16x16xf32>
    %115 = tpu.matmul %66, %114, %cst_40 {dimension_numbers = #tpu.dot_dimension_numbers<[1], [0], [0], [1], [0, 0, 1, 1], [], []>} : vector<16x16xf32>, vector<16x16xf32>, vector<16x16xf32> -> vector<16x16xf32>
    %116 = arith.addf %115, %86 : vector<16x16xf32>
    %cst_41 = arith.constant dense<0.000000e+00> : vector<16x16xf32>
    %117 = tpu.matmul %71, %114, %cst_41 {dimension_numbers = #tpu.dot_dimension_numbers<[1], [0], [0], [1], [0, 0, 1, 1], [], []>} : vector<16x16xf32>, vector<16x16xf32>, vector<16x16xf32> -> vector<16x16xf32>
    %118 = arith.addf %117, %91 : vector<16x16xf32>
    %119 = arith.minimumf %116, %118 : vector<16x16xf32>
    %120 = arith.minimumf %114, %119 : vector<16x16xf32>
    %cst_42 = arith.constant dense<0.000000e+00> : vector<16x16xf32>
    %121 = tpu.matmul %120, %76, %cst_42 {dimension_numbers = #tpu.dot_dimension_numbers<[1], [0], [0], [1], [0, 0, 1, 1], [], []>} : vector<16x16xf32>, vector<16x16xf32>, vector<16x16xf32> -> vector<16x16xf32>
    %122 = arith.addf %121, %96 : vector<16x16xf32>
    %cst_43 = arith.constant dense<0.000000e+00> : vector<16x16xf32>
    %123 = tpu.matmul %120, %81, %cst_43 {dimension_numbers = #tpu.dot_dimension_numbers<[1], [0], [0], [1], [0, 0, 1, 1], [], []>} : vector<16x16xf32>, vector<16x16xf32>, vector<16x16xf32> -> vector<16x16xf32>
    %124 = arith.addf %123, %101 : vector<16x16xf32>
    %125 = arith.minimumf %122, %124 : vector<16x16xf32>
    %126 = arith.minimumf %120, %125 : vector<16x16xf32>
    %127 = arith.subf %102, %126 : vector<16x16xf32>
    %128 = arith.fptosi %127 : vector<16x16xf32> to vector<16x16xi32>
    %c0_i32_44 = arith.constant 0 : i32
    %129 = vector.broadcast %c0_i32_44 : i32 to vector<16x16xi32>
    %130 = arith.cmpi eq, %1, %129 : vector<16x16xi32>
    %131 = arith.extui %130 : vector<16x16xi1> to vector<16x16xi32>
    %132 = arith.sitofp %131 : vector<16x16xi32> to vector<16x16xf32>
    %133 = arith.mulf %45, %132 : vector<16x16xf32>
    %134 = vector.shape_cast %133 : vector<16x16xf32> to vector<1x16x16xf32>
    %cst_45 = arith.constant dense<0.000000e+00> : vector<1xf32>
    %135 = vector.multi_reduction <add>, %134, %cst_45 [1, 2] : vector<1x16x16xf32> to vector<1xf32>
    %136 = vector.shape_cast %135 : vector<1xf32> to vector<1x1x1xf32>
    %137 = vector.extract %136[0, 0, 0] : f32 from vector<1x1x1xf32>
    %138 = vector.shape_cast %45 : vector<16x16xf32> to vector<1x16x16xf32>
    %cst_46 = arith.constant dense<0.000000e+00> : vector<1xf32>
    %139 = vector.multi_reduction <add>, %138, %cst_46 [1, 2] : vector<1x16x16xf32> to vector<1xf32>
    %140 = vector.shape_cast %139 : vector<1xf32> to vector<1x1x1xf32>
    %141 = vector.extract %140[0, 0, 0] : f32 from vector<1x1x1xf32>
    %142 = vector.shape_cast %132 : vector<16x16xf32> to vector<1x16x16xf32>
    %cst_47 = arith.constant dense<0.000000e+00> : vector<1xf32>
    %143 = vector.multi_reduction <add>, %142, %cst_47 [1, 2] : vector<1x16x16xf32> to vector<1xf32>
    %144 = vector.shape_cast %143 : vector<1xf32> to vector<1x1x1xf32>
    %145 = vector.extract %144[0, 0, 0] : f32 from vector<1x1x1xf32>
    %cst_48 = arith.constant dense<0.000000e+00> : vector<16x16xf32>
    %146 = tpu.matmul %66, %45, %cst_48 {dimension_numbers = #tpu.dot_dimension_numbers<[1], [0], [0], [1], [0, 0, 1, 1], [], []>} : vector<16x16xf32>, vector<16x16xf32>, vector<16x16xf32> -> vector<16x16xf32>
    %147 = arith.addf %146, %86 : vector<16x16xf32>
    %cst_49 = arith.constant dense<0.000000e+00> : vector<16x16xf32>
    %148 = tpu.matmul %71, %45, %cst_49 {dimension_numbers = #tpu.dot_dimension_numbers<[1], [0], [0], [1], [0, 0, 1, 1], [], []>} : vector<16x16xf32>, vector<16x16xf32>, vector<16x16xf32> -> vector<16x16xf32>
    %149 = arith.addf %148, %91 : vector<16x16xf32>
    %150 = arith.minimumf %147, %149 : vector<16x16xf32>
    %151 = arith.minimumf %45, %150 : vector<16x16xf32>
    %cst_50 = arith.constant dense<0.000000e+00> : vector<16x16xf32>
    %152 = tpu.matmul %151, %76, %cst_50 {dimension_numbers = #tpu.dot_dimension_numbers<[1], [0], [0], [1], [0, 0, 1, 1], [], []>} : vector<16x16xf32>, vector<16x16xf32>, vector<16x16xf32> -> vector<16x16xf32>
    %153 = arith.addf %152, %96 : vector<16x16xf32>
    %cst_51 = arith.constant dense<0.000000e+00> : vector<16x16xf32>
    %154 = tpu.matmul %151, %81, %cst_51 {dimension_numbers = #tpu.dot_dimension_numbers<[1], [0], [0], [1], [0, 0, 1, 1], [], []>} : vector<16x16xf32>, vector<16x16xf32>, vector<16x16xf32> -> vector<16x16xf32>
    %155 = arith.addf %154, %101 : vector<16x16xf32>
    %156 = arith.minimumf %153, %155 : vector<16x16xf32>
    %157 = arith.minimumf %151, %156 : vector<16x16xf32>
    %cst_52 = arith.constant dense<0.000000e+00> : vector<16x16xf32>
    %158 = tpu.matmul %66, %157, %cst_52 {dimension_numbers = #tpu.dot_dimension_numbers<[1], [0], [0], [1], [0, 0, 1, 1], [], []>} : vector<16x16xf32>, vector<16x16xf32>, vector<16x16xf32> -> vector<16x16xf32>
    %159 = arith.addf %158, %86 : vector<16x16xf32>
    %cst_53 = arith.constant dense<0.000000e+00> : vector<16x16xf32>
    %160 = tpu.matmul %71, %157, %cst_53 {dimension_numbers = #tpu.dot_dimension_numbers<[1], [0], [0], [1], [0, 0, 1, 1], [], []>} : vector<16x16xf32>, vector<16x16xf32>, vector<16x16xf32> -> vector<16x16xf32>
    %161 = arith.addf %160, %91 : vector<16x16xf32>
    %162 = arith.minimumf %159, %161 : vector<16x16xf32>
    %163 = arith.minimumf %157, %162 : vector<16x16xf32>
    %cst_54 = arith.constant dense<0.000000e+00> : vector<16x16xf32>
    %164 = tpu.matmul %163, %76, %cst_54 {dimension_numbers = #tpu.dot_dimension_numbers<[1], [0], [0], [1], [0, 0, 1, 1], [], []>} : vector<16x16xf32>, vector<16x16xf32>, vector<16x16xf32> -> vector<16x16xf32>
    %165 = arith.addf %164, %96 : vector<16x16xf32>
    %cst_55 = arith.constant dense<0.000000e+00> : vector<16x16xf32>
    %166 = tpu.matmul %163, %81, %cst_55 {dimension_numbers = #tpu.dot_dimension_numbers<[1], [0], [0], [1], [0, 0, 1, 1], [], []>} : vector<16x16xf32>, vector<16x16xf32>, vector<16x16xf32> -> vector<16x16xf32>
    %167 = arith.addf %166, %101 : vector<16x16xf32>
    %168 = arith.minimumf %165, %167 : vector<16x16xf32>
    %169 = arith.minimumf %163, %168 : vector<16x16xf32>
    %170 = arith.subf %45, %169 : vector<16x16xf32>
    %c0_i32_56 = arith.constant 0 : i32
    %171 = vector.broadcast %c0_i32_56 : i32 to vector<16x16xi32>
    %172 = arith.cmpi eq, %128, %171 : vector<16x16xi32>
    %173 = arith.extui %172 : vector<16x16xi1> to vector<16x16xi32>
    %174 = arith.sitofp %173 : vector<16x16xi32> to vector<16x16xf32>
    %175 = arith.mulf %170, %174 : vector<16x16xf32>
    %176 = vector.shape_cast %175 : vector<16x16xf32> to vector<1x16x16xf32>
    %cst_57 = arith.constant dense<0.000000e+00> : vector<1xf32>
    %177 = vector.multi_reduction <add>, %176, %cst_57 [1, 2] : vector<1x16x16xf32> to vector<1xf32>
    %178 = vector.shape_cast %177 : vector<1xf32> to vector<1x1x1xf32>
    %179 = vector.extract %178[0, 0, 0] : f32 from vector<1x1x1xf32>
    %180 = vector.shape_cast %170 : vector<16x16xf32> to vector<1x16x16xf32>
    %cst_58 = arith.constant dense<0.000000e+00> : vector<1xf32>
    %181 = vector.multi_reduction <add>, %180, %cst_58 [1, 2] : vector<1x16x16xf32> to vector<1xf32>
    %182 = vector.shape_cast %181 : vector<1xf32> to vector<1x1x1xf32>
    %183 = vector.extract %182[0, 0, 0] : f32 from vector<1x1x1xf32>
    %184 = vector.shape_cast %174 : vector<16x16xf32> to vector<1x16x16xf32>
    %cst_59 = arith.constant dense<0.000000e+00> : vector<1xf32>
    %185 = vector.multi_reduction <add>, %184, %cst_59 [1, 2] : vector<1x16x16xf32> to vector<1xf32>
    %186 = vector.shape_cast %185 : vector<1xf32> to vector<1x1x1xf32>
    %187 = vector.extract %186[0, 0, 0] : f32 from vector<1x1x1xf32>
    %c1_i32_60 = arith.constant 1 : i32
    %188 = vector.broadcast %c1_i32_60 : i32 to vector<16x16xi32>
    %189 = arith.cmpi eq, %1, %188 : vector<16x16xi32>
    %190 = arith.extui %189 : vector<16x16xi1> to vector<16x16xi32>
    %191 = arith.sitofp %190 : vector<16x16xi32> to vector<16x16xf32>
    %192 = arith.mulf %46, %191 : vector<16x16xf32>
    %193 = vector.shape_cast %192 : vector<16x16xf32> to vector<1x16x16xf32>
    %cst_61 = arith.constant dense<0.000000e+00> : vector<1xf32>
    %194 = vector.multi_reduction <add>, %193, %cst_61 [1, 2] : vector<1x16x16xf32> to vector<1xf32>
    %195 = vector.shape_cast %194 : vector<1xf32> to vector<1x1x1xf32>
    %196 = vector.extract %195[0, 0, 0] : f32 from vector<1x1x1xf32>
    %197 = vector.shape_cast %46 : vector<16x16xf32> to vector<1x16x16xf32>
    %cst_62 = arith.constant dense<0.000000e+00> : vector<1xf32>
    %198 = vector.multi_reduction <add>, %197, %cst_62 [1, 2] : vector<1x16x16xf32> to vector<1xf32>
    %199 = vector.shape_cast %198 : vector<1xf32> to vector<1x1x1xf32>
    %200 = vector.extract %199[0, 0, 0] : f32 from vector<1x1x1xf32>
    %201 = vector.shape_cast %191 : vector<16x16xf32> to vector<1x16x16xf32>
    %cst_63 = arith.constant dense<0.000000e+00> : vector<1xf32>
    %202 = vector.multi_reduction <add>, %201, %cst_63 [1, 2] : vector<1x16x16xf32> to vector<1xf32>
    %203 = vector.shape_cast %202 : vector<1xf32> to vector<1x1x1xf32>
    %204 = vector.extract %203[0, 0, 0] : f32 from vector<1x1x1xf32>
    %cst_64 = arith.constant dense<0.000000e+00> : vector<16x16xf32>
    %205 = tpu.matmul %66, %46, %cst_64 {dimension_numbers = #tpu.dot_dimension_numbers<[1], [0], [0], [1], [0, 0, 1, 1], [], []>} : vector<16x16xf32>, vector<16x16xf32>, vector<16x16xf32> -> vector<16x16xf32>
    %206 = arith.addf %205, %86 : vector<16x16xf32>
    %cst_65 = arith.constant dense<0.000000e+00> : vector<16x16xf32>
    %207 = tpu.matmul %71, %46, %cst_65 {dimension_numbers = #tpu.dot_dimension_numbers<[1], [0], [0], [1], [0, 0, 1, 1], [], []>} : vector<16x16xf32>, vector<16x16xf32>, vector<16x16xf32> -> vector<16x16xf32>
    %208 = arith.addf %207, %91 : vector<16x16xf32>
    %209 = arith.minimumf %206, %208 : vector<16x16xf32>
    %210 = arith.minimumf %46, %209 : vector<16x16xf32>
    %cst_66 = arith.constant dense<0.000000e+00> : vector<16x16xf32>
    %211 = tpu.matmul %210, %76, %cst_66 {dimension_numbers = #tpu.dot_dimension_numbers<[1], [0], [0], [1], [0, 0, 1, 1], [], []>} : vector<16x16xf32>, vector<16x16xf32>, vector<16x16xf32> -> vector<16x16xf32>
    %212 = arith.addf %211, %96 : vector<16x16xf32>
    %cst_67 = arith.constant dense<0.000000e+00> : vector<16x16xf32>
    %213 = tpu.matmul %210, %81, %cst_67 {dimension_numbers = #tpu.dot_dimension_numbers<[1], [0], [0], [1], [0, 0, 1, 1], [], []>} : vector<16x16xf32>, vector<16x16xf32>, vector<16x16xf32> -> vector<16x16xf32>
    %214 = arith.addf %213, %101 : vector<16x16xf32>
    %215 = arith.minimumf %212, %214 : vector<16x16xf32>
    %216 = arith.minimumf %210, %215 : vector<16x16xf32>
    %cst_68 = arith.constant dense<0.000000e+00> : vector<16x16xf32>
    %217 = tpu.matmul %66, %216, %cst_68 {dimension_numbers = #tpu.dot_dimension_numbers<[1], [0], [0], [1], [0, 0, 1, 1], [], []>} : vector<16x16xf32>, vector<16x16xf32>, vector<16x16xf32> -> vector<16x16xf32>
    %218 = arith.addf %217, %86 : vector<16x16xf32>
    %cst_69 = arith.constant dense<0.000000e+00> : vector<16x16xf32>
    %219 = tpu.matmul %71, %216, %cst_69 {dimension_numbers = #tpu.dot_dimension_numbers<[1], [0], [0], [1], [0, 0, 1, 1], [], []>} : vector<16x16xf32>, vector<16x16xf32>, vector<16x16xf32> -> vector<16x16xf32>
    %220 = arith.addf %219, %91 : vector<16x16xf32>
    %221 = arith.minimumf %218, %220 : vector<16x16xf32>
    %222 = arith.minimumf %216, %221 : vector<16x16xf32>
    %cst_70 = arith.constant dense<0.000000e+00> : vector<16x16xf32>
    %223 = tpu.matmul %222, %76, %cst_70 {dimension_numbers = #tpu.dot_dimension_numbers<[1], [0], [0], [1], [0, 0, 1, 1], [], []>} : vector<16x16xf32>, vector<16x16xf32>, vector<16x16xf32> -> vector<16x16xf32>
    %224 = arith.addf %223, %96 : vector<16x16xf32>
    %cst_71 = arith.constant dense<0.000000e+00> : vector<16x16xf32>
    %225 = tpu.matmul %222, %81, %cst_71 {dimension_numbers = #tpu.dot_dimension_numbers<[1], [0], [0], [1], [0, 0, 1, 1], [], []>} : vector<16x16xf32>, vector<16x16xf32>, vector<16x16xf32> -> vector<16x16xf32>
    %226 = arith.addf %225, %101 : vector<16x16xf32>
    %227 = arith.minimumf %224, %226 : vector<16x16xf32>
    %228 = arith.minimumf %222, %227 : vector<16x16xf32>
    %229 = arith.subf %46, %228 : vector<16x16xf32>
    %c1_i32_72 = arith.constant 1 : i32
    %230 = vector.broadcast %c1_i32_72 : i32 to vector<16x16xi32>
    %231 = arith.cmpi eq, %128, %230 : vector<16x16xi32>
    %232 = arith.extui %231 : vector<16x16xi1> to vector<16x16xi32>
    %233 = arith.sitofp %232 : vector<16x16xi32> to vector<16x16xf32>
    %234 = arith.mulf %229, %233 : vector<16x16xf32>
    %235 = vector.shape_cast %234 : vector<16x16xf32> to vector<1x16x16xf32>
    %cst_73 = arith.constant dense<0.000000e+00> : vector<1xf32>
    %236 = vector.multi_reduction <add>, %235, %cst_73 [1, 2] : vector<1x16x16xf32> to vector<1xf32>
    %237 = vector.shape_cast %236 : vector<1xf32> to vector<1x1x1xf32>
    %238 = vector.extract %237[0, 0, 0] : f32 from vector<1x1x1xf32>
    %239 = vector.shape_cast %229 : vector<16x16xf32> to vector<1x16x16xf32>
    %cst_74 = arith.constant dense<0.000000e+00> : vector<1xf32>
    %240 = vector.multi_reduction <add>, %239, %cst_74 [1, 2] : vector<1x16x16xf32> to vector<1xf32>
    %241 = vector.shape_cast %240 : vector<1xf32> to vector<1x1x1xf32>
    %242 = vector.extract %241[0, 0, 0] : f32 from vector<1x1x1xf32>
    %243 = vector.shape_cast %233 : vector<16x16xf32> to vector<1x16x16xf32>
    %cst_75 = arith.constant dense<0.000000e+00> : vector<1xf32>
    %244 = vector.multi_reduction <add>, %243, %cst_75 [1, 2] : vector<1x16x16xf32> to vector<1xf32>
    %245 = vector.shape_cast %244 : vector<1xf32> to vector<1x1x1xf32>
    %246 = vector.extract %245[0, 0, 0] : f32 from vector<1x1x1xf32>
    %c2_i32_76 = arith.constant 2 : i32
    %247 = vector.broadcast %c2_i32_76 : i32 to vector<16x16xi32>
    %248 = arith.cmpi eq, %1, %247 : vector<16x16xi32>
    %249 = arith.extui %248 : vector<16x16xi1> to vector<16x16xi32>
    %250 = arith.sitofp %249 : vector<16x16xi32> to vector<16x16xf32>
    %251 = arith.mulf %47, %250 : vector<16x16xf32>
    %252 = vector.shape_cast %251 : vector<16x16xf32> to vector<1x16x16xf32>
    %cst_77 = arith.constant dense<0.000000e+00> : vector<1xf32>
    %253 = vector.multi_reduction <add>, %252, %cst_77 [1, 2] : vector<1x16x16xf32> to vector<1xf32>
    %254 = vector.shape_cast %253 : vector<1xf32> to vector<1x1x1xf32>
    %255 = vector.extract %254[0, 0, 0] : f32 from vector<1x1x1xf32>
    %256 = vector.shape_cast %47 : vector<16x16xf32> to vector<1x16x16xf32>
    %cst_78 = arith.constant dense<0.000000e+00> : vector<1xf32>
    %257 = vector.multi_reduction <add>, %256, %cst_78 [1, 2] : vector<1x16x16xf32> to vector<1xf32>
    %258 = vector.shape_cast %257 : vector<1xf32> to vector<1x1x1xf32>
    %259 = vector.extract %258[0, 0, 0] : f32 from vector<1x1x1xf32>
    %260 = vector.shape_cast %250 : vector<16x16xf32> to vector<1x16x16xf32>
    %cst_79 = arith.constant dense<0.000000e+00> : vector<1xf32>
    %261 = vector.multi_reduction <add>, %260, %cst_79 [1, 2] : vector<1x16x16xf32> to vector<1xf32>
    %262 = vector.shape_cast %261 : vector<1xf32> to vector<1x1x1xf32>
    %263 = vector.extract %262[0, 0, 0] : f32 from vector<1x1x1xf32>
    %cst_80 = arith.constant dense<0.000000e+00> : vector<16x16xf32>
    %264 = tpu.matmul %66, %47, %cst_80 {dimension_numbers = #tpu.dot_dimension_numbers<[1], [0], [0], [1], [0, 0, 1, 1], [], []>} : vector<16x16xf32>, vector<16x16xf32>, vector<16x16xf32> -> vector<16x16xf32>
    %265 = arith.addf %264, %86 : vector<16x16xf32>
    %cst_81 = arith.constant dense<0.000000e+00> : vector<16x16xf32>
    %266 = tpu.matmul %71, %47, %cst_81 {dimension_numbers = #tpu.dot_dimension_numbers<[1], [0], [0], [1], [0, 0, 1, 1], [], []>} : vector<16x16xf32>, vector<16x16xf32>, vector<16x16xf32> -> vector<16x16xf32>
    %267 = arith.addf %266, %91 : vector<16x16xf32>
    %268 = arith.minimumf %265, %267 : vector<16x16xf32>
    %269 = arith.minimumf %47, %268 : vector<16x16xf32>
    %cst_82 = arith.constant dense<0.000000e+00> : vector<16x16xf32>
    %270 = tpu.matmul %269, %76, %cst_82 {dimension_numbers = #tpu.dot_dimension_numbers<[1], [0], [0], [1], [0, 0, 1, 1], [], []>} : vector<16x16xf32>, vector<16x16xf32>, vector<16x16xf32> -> vector<16x16xf32>
    %271 = arith.addf %270, %96 : vector<16x16xf32>
    %cst_83 = arith.constant dense<0.000000e+00> : vector<16x16xf32>
    %272 = tpu.matmul %269, %81, %cst_83 {dimension_numbers = #tpu.dot_dimension_numbers<[1], [0], [0], [1], [0, 0, 1, 1], [], []>} : vector<16x16xf32>, vector<16x16xf32>, vector<16x16xf32> -> vector<16x16xf32>
    %273 = arith.addf %272, %101 : vector<16x16xf32>
    %274 = arith.minimumf %271, %273 : vector<16x16xf32>
    %275 = arith.minimumf %269, %274 : vector<16x16xf32>
    %cst_84 = arith.constant dense<0.000000e+00> : vector<16x16xf32>
    %276 = tpu.matmul %66, %275, %cst_84 {dimension_numbers = #tpu.dot_dimension_numbers<[1], [0], [0], [1], [0, 0, 1, 1], [], []>} : vector<16x16xf32>, vector<16x16xf32>, vector<16x16xf32> -> vector<16x16xf32>
    %277 = arith.addf %276, %86 : vector<16x16xf32>
    %cst_85 = arith.constant dense<0.000000e+00> : vector<16x16xf32>
    %278 = tpu.matmul %71, %275, %cst_85 {dimension_numbers = #tpu.dot_dimension_numbers<[1], [0], [0], [1], [0, 0, 1, 1], [], []>} : vector<16x16xf32>, vector<16x16xf32>, vector<16x16xf32> -> vector<16x16xf32>
    %279 = arith.addf %278, %91 : vector<16x16xf32>
    %280 = arith.minimumf %277, %279 : vector<16x16xf32>
    %281 = arith.minimumf %275, %280 : vector<16x16xf32>
    %cst_86 = arith.constant dense<0.000000e+00> : vector<16x16xf32>
    %282 = tpu.matmul %281, %76, %cst_86 {dimension_numbers = #tpu.dot_dimension_numbers<[1], [0], [0], [1], [0, 0, 1, 1], [], []>} : vector<16x16xf32>, vector<16x16xf32>, vector<16x16xf32> -> vector<16x16xf32>
    %283 = arith.addf %282, %96 : vector<16x16xf32>
    %cst_87 = arith.constant dense<0.000000e+00> : vector<16x16xf32>
    %284 = tpu.matmul %281, %81, %cst_87 {dimension_numbers = #tpu.dot_dimension_numbers<[1], [0], [0], [1], [0, 0, 1, 1], [], []>} : vector<16x16xf32>, vector<16x16xf32>, vector<16x16xf32> -> vector<16x16xf32>
    %285 = arith.addf %284, %101 : vector<16x16xf32>
    %286 = arith.minimumf %283, %285 : vector<16x16xf32>
    %287 = arith.minimumf %281, %286 : vector<16x16xf32>
    %288 = arith.subf %47, %287 : vector<16x16xf32>
    %c2_i32_88 = arith.constant 2 : i32
    %289 = vector.broadcast %c2_i32_88 : i32 to vector<16x16xi32>
    %290 = arith.cmpi eq, %128, %289 : vector<16x16xi32>
    %291 = arith.extui %290 : vector<16x16xi1> to vector<16x16xi32>
    %292 = arith.sitofp %291 : vector<16x16xi32> to vector<16x16xf32>
    %293 = arith.mulf %288, %292 : vector<16x16xf32>
    %294 = vector.shape_cast %293 : vector<16x16xf32> to vector<1x16x16xf32>
    %cst_89 = arith.constant dense<0.000000e+00> : vector<1xf32>
    %295 = vector.multi_reduction <add>, %294, %cst_89 [1, 2] : vector<1x16x16xf32> to vector<1xf32>
    %296 = vector.shape_cast %295 : vector<1xf32> to vector<1x1x1xf32>
    %297 = vector.extract %296[0, 0, 0] : f32 from vector<1x1x1xf32>
    %298 = vector.shape_cast %288 : vector<16x16xf32> to vector<1x16x16xf32>
    %cst_90 = arith.constant dense<0.000000e+00> : vector<1xf32>
    %299 = vector.multi_reduction <add>, %298, %cst_90 [1, 2] : vector<1x16x16xf32> to vector<1xf32>
    %300 = vector.shape_cast %299 : vector<1xf32> to vector<1x1x1xf32>
    %301 = vector.extract %300[0, 0, 0] : f32 from vector<1x1x1xf32>
    %302 = vector.shape_cast %292 : vector<16x16xf32> to vector<1x16x16xf32>
    %cst_91 = arith.constant dense<0.000000e+00> : vector<1xf32>
    %303 = vector.multi_reduction <add>, %302, %cst_91 [1, 2] : vector<1x16x16xf32> to vector<1xf32>
    %304 = vector.shape_cast %303 : vector<1xf32> to vector<1x1x1xf32>
    %305 = vector.extract %304[0, 0, 0] : f32 from vector<1x1x1xf32>
    %c3_i32_92 = arith.constant 3 : i32
    %306 = vector.broadcast %c3_i32_92 : i32 to vector<16x16xi32>
    %307 = arith.cmpi eq, %1, %306 : vector<16x16xi32>
    %308 = arith.extui %307 : vector<16x16xi1> to vector<16x16xi32>
    %309 = arith.sitofp %308 : vector<16x16xi32> to vector<16x16xf32>
    %310 = arith.mulf %48, %309 : vector<16x16xf32>
    %311 = vector.shape_cast %310 : vector<16x16xf32> to vector<1x16x16xf32>
    %cst_93 = arith.constant dense<0.000000e+00> : vector<1xf32>
    %312 = vector.multi_reduction <add>, %311, %cst_93 [1, 2] : vector<1x16x16xf32> to vector<1xf32>
    %313 = vector.shape_cast %312 : vector<1xf32> to vector<1x1x1xf32>
    %314 = vector.extract %313[0, 0, 0] : f32 from vector<1x1x1xf32>
    %315 = vector.shape_cast %48 : vector<16x16xf32> to vector<1x16x16xf32>
    %cst_94 = arith.constant dense<0.000000e+00> : vector<1xf32>
    %316 = vector.multi_reduction <add>, %315, %cst_94 [1, 2] : vector<1x16x16xf32> to vector<1xf32>
    %317 = vector.shape_cast %316 : vector<1xf32> to vector<1x1x1xf32>
    %318 = vector.extract %317[0, 0, 0] : f32 from vector<1x1x1xf32>
    %319 = vector.shape_cast %309 : vector<16x16xf32> to vector<1x16x16xf32>
    %cst_95 = arith.constant dense<0.000000e+00> : vector<1xf32>
    %320 = vector.multi_reduction <add>, %319, %cst_95 [1, 2] : vector<1x16x16xf32> to vector<1xf32>
    %321 = vector.shape_cast %320 : vector<1xf32> to vector<1x1x1xf32>
    %322 = vector.extract %321[0, 0, 0] : f32 from vector<1x1x1xf32>
    %cst_96 = arith.constant dense<0.000000e+00> : vector<16x16xf32>
    %323 = tpu.matmul %66, %48, %cst_96 {dimension_numbers = #tpu.dot_dimension_numbers<[1], [0], [0], [1], [0, 0, 1, 1], [], []>} : vector<16x16xf32>, vector<16x16xf32>, vector<16x16xf32> -> vector<16x16xf32>
    %324 = arith.addf %323, %86 : vector<16x16xf32>
    %cst_97 = arith.constant dense<0.000000e+00> : vector<16x16xf32>
    %325 = tpu.matmul %71, %48, %cst_97 {dimension_numbers = #tpu.dot_dimension_numbers<[1], [0], [0], [1], [0, 0, 1, 1], [], []>} : vector<16x16xf32>, vector<16x16xf32>, vector<16x16xf32> -> vector<16x16xf32>
    %326 = arith.addf %325, %91 : vector<16x16xf32>
    %327 = arith.minimumf %324, %326 : vector<16x16xf32>
    %328 = arith.minimumf %48, %327 : vector<16x16xf32>
    %cst_98 = arith.constant dense<0.000000e+00> : vector<16x16xf32>
    %329 = tpu.matmul %328, %76, %cst_98 {dimension_numbers = #tpu.dot_dimension_numbers<[1], [0], [0], [1], [0, 0, 1, 1], [], []>} : vector<16x16xf32>, vector<16x16xf32>, vector<16x16xf32> -> vector<16x16xf32>
    %330 = arith.addf %329, %96 : vector<16x16xf32>
    %cst_99 = arith.constant dense<0.000000e+00> : vector<16x16xf32>
    %331 = tpu.matmul %328, %81, %cst_99 {dimension_numbers = #tpu.dot_dimension_numbers<[1], [0], [0], [1], [0, 0, 1, 1], [], []>} : vector<16x16xf32>, vector<16x16xf32>, vector<16x16xf32> -> vector<16x16xf32>
    %332 = arith.addf %331, %101 : vector<16x16xf32>
    %333 = arith.minimumf %330, %332 : vector<16x16xf32>
    %334 = arith.minimumf %328, %333 : vector<16x16xf32>
    %cst_100 = arith.constant dense<0.000000e+00> : vector<16x16xf32>
    %335 = tpu.matmul %66, %334, %cst_100 {dimension_numbers = #tpu.dot_dimension_numbers<[1], [0], [0], [1], [0, 0, 1, 1], [], []>} : vector<16x16xf32>, vector<16x16xf32>, vector<16x16xf32> -> vector<16x16xf32>
    %336 = arith.addf %335, %86 : vector<16x16xf32>
    %cst_101 = arith.constant dense<0.000000e+00> : vector<16x16xf32>
    %337 = tpu.matmul %71, %334, %cst_101 {dimension_numbers = #tpu.dot_dimension_numbers<[1], [0], [0], [1], [0, 0, 1, 1], [], []>} : vector<16x16xf32>, vector<16x16xf32>, vector<16x16xf32> -> vector<16x16xf32>
    %338 = arith.addf %337, %91 : vector<16x16xf32>
    %339 = arith.minimumf %336, %338 : vector<16x16xf32>
    %340 = arith.minimumf %334, %339 : vector<16x16xf32>
    %cst_102 = arith.constant dense<0.000000e+00> : vector<16x16xf32>
    %341 = tpu.matmul %340, %76, %cst_102 {dimension_numbers = #tpu.dot_dimension_numbers<[1], [0], [0], [1], [0, 0, 1, 1], [], []>} : vector<16x16xf32>, vector<16x16xf32>, vector<16x16xf32> -> vector<16x16xf32>
    %342 = arith.addf %341, %96 : vector<16x16xf32>
    %cst_103 = arith.constant dense<0.000000e+00> : vector<16x16xf32>
    %343 = tpu.matmul %340, %81, %cst_103 {dimension_numbers = #tpu.dot_dimension_numbers<[1], [0], [0], [1], [0, 0, 1, 1], [], []>} : vector<16x16xf32>, vector<16x16xf32>, vector<16x16xf32> -> vector<16x16xf32>
    %344 = arith.addf %343, %101 : vector<16x16xf32>
    %345 = arith.minimumf %342, %344 : vector<16x16xf32>
    %346 = arith.minimumf %340, %345 : vector<16x16xf32>
    %347 = arith.subf %48, %346 : vector<16x16xf32>
    %c3_i32_104 = arith.constant 3 : i32
    %348 = vector.broadcast %c3_i32_104 : i32 to vector<16x16xi32>
    %349 = arith.cmpi eq, %128, %348 : vector<16x16xi32>
    %350 = arith.extui %349 : vector<16x16xi1> to vector<16x16xi32>
    %351 = arith.sitofp %350 : vector<16x16xi32> to vector<16x16xf32>
    %352 = arith.mulf %347, %351 : vector<16x16xf32>
    %353 = vector.shape_cast %352 : vector<16x16xf32> to vector<1x16x16xf32>
    %cst_105 = arith.constant dense<0.000000e+00> : vector<1xf32>
    %354 = vector.multi_reduction <add>, %353, %cst_105 [1, 2] : vector<1x16x16xf32> to vector<1xf32>
    %355 = vector.shape_cast %354 : vector<1xf32> to vector<1x1x1xf32>
    %356 = vector.extract %355[0, 0, 0] : f32 from vector<1x1x1xf32>
    %357 = vector.shape_cast %347 : vector<16x16xf32> to vector<1x16x16xf32>
    %cst_106 = arith.constant dense<0.000000e+00> : vector<1xf32>
    %358 = vector.multi_reduction <add>, %357, %cst_106 [1, 2] : vector<1x16x16xf32> to vector<1xf32>
    %359 = vector.shape_cast %358 : vector<1xf32> to vector<1x1x1xf32>
    %360 = vector.extract %359[0, 0, 0] : f32 from vector<1x1x1xf32>
    %361 = vector.shape_cast %351 : vector<16x16xf32> to vector<1x16x16xf32>
    %cst_107 = arith.constant dense<0.000000e+00> : vector<1xf32>
    %362 = vector.multi_reduction <add>, %361, %cst_107 [1, 2] : vector<1x16x16xf32> to vector<1xf32>
    %363 = vector.shape_cast %362 : vector<1xf32> to vector<1x1x1xf32>
    %364 = vector.extract %363[0, 0, 0] : f32 from vector<1x1x1xf32>
    %365 = tpu.iota {dimensions = array<i32: 0>} : vector<8x128xi32>
    %366 = tpu.iota {dimensions = array<i32: 1>} : vector<8x128xi32>
    %cst_108 = arith.constant 0.000000e+00 : f32
    %367 = vector.broadcast %cst_108 : f32 to vector<8x128xf32>
    %c0_i32_109 = arith.constant 0 : i32
    %368 = vector.broadcast %c0_i32_109 : i32 to vector<8x128xi32>
    %369 = arith.cmpi eq, %365, %368 : vector<8x128xi32>
    %c0_i32_110 = arith.constant 0 : i32
    %370 = vector.broadcast %c0_i32_110 : i32 to vector<8x128xi32>
    %371 = arith.cmpi eq, %366, %370 : vector<8x128xi32>
    %372 = arith.andi %369, %371 : vector<8x128xi1>
    %cst_111 = arith.constant 0.000000e+00 : f32
    %373 = vector.broadcast %137 : f32 to vector<8x128xf32>
    %374 = vector.broadcast %cst_111 : f32 to vector<8x128xf32>
    %375 = arith.select %372, %373, %374 : vector<8x128xi1>, vector<8x128xf32>
    %376 = arith.addf %367, %375 : vector<8x128xf32>
    %c0_i32_112 = arith.constant 0 : i32
    %377 = vector.broadcast %c0_i32_112 : i32 to vector<8x128xi32>
    %378 = arith.cmpi eq, %365, %377 : vector<8x128xi32>
    %c1_i32_113 = arith.constant 1 : i32
    %379 = vector.broadcast %c1_i32_113 : i32 to vector<8x128xi32>
    %380 = arith.cmpi eq, %366, %379 : vector<8x128xi32>
    %381 = arith.andi %378, %380 : vector<8x128xi1>
    %cst_114 = arith.constant 0.000000e+00 : f32
    %382 = vector.broadcast %196 : f32 to vector<8x128xf32>
    %383 = vector.broadcast %cst_114 : f32 to vector<8x128xf32>
    %384 = arith.select %381, %382, %383 : vector<8x128xi1>, vector<8x128xf32>
    %385 = arith.addf %376, %384 : vector<8x128xf32>
    %c0_i32_115 = arith.constant 0 : i32
    %386 = vector.broadcast %c0_i32_115 : i32 to vector<8x128xi32>
    %387 = arith.cmpi eq, %365, %386 : vector<8x128xi32>
    %c2_i32_116 = arith.constant 2 : i32
    %388 = vector.broadcast %c2_i32_116 : i32 to vector<8x128xi32>
    %389 = arith.cmpi eq, %366, %388 : vector<8x128xi32>
    %390 = arith.andi %387, %389 : vector<8x128xi1>
    %cst_117 = arith.constant 0.000000e+00 : f32
    %391 = vector.broadcast %255 : f32 to vector<8x128xf32>
    %392 = vector.broadcast %cst_117 : f32 to vector<8x128xf32>
    %393 = arith.select %390, %391, %392 : vector<8x128xi1>, vector<8x128xf32>
    %394 = arith.addf %385, %393 : vector<8x128xf32>
    %c0_i32_118 = arith.constant 0 : i32
    %395 = vector.broadcast %c0_i32_118 : i32 to vector<8x128xi32>
    %396 = arith.cmpi eq, %365, %395 : vector<8x128xi32>
    %c3_i32_119 = arith.constant 3 : i32
    %397 = vector.broadcast %c3_i32_119 : i32 to vector<8x128xi32>
    %398 = arith.cmpi eq, %366, %397 : vector<8x128xi32>
    %399 = arith.andi %396, %398 : vector<8x128xi1>
    %cst_120 = arith.constant 0.000000e+00 : f32
    %400 = vector.broadcast %314 : f32 to vector<8x128xf32>
    %401 = vector.broadcast %cst_120 : f32 to vector<8x128xf32>
    %402 = arith.select %399, %400, %401 : vector<8x128xi1>, vector<8x128xf32>
    %403 = arith.addf %394, %402 : vector<8x128xf32>
    %c1_i32_121 = arith.constant 1 : i32
    %404 = vector.broadcast %c1_i32_121 : i32 to vector<8x128xi32>
    %405 = arith.cmpi eq, %365, %404 : vector<8x128xi32>
    %c0_i32_122 = arith.constant 0 : i32
    %406 = vector.broadcast %c0_i32_122 : i32 to vector<8x128xi32>
    %407 = arith.cmpi eq, %366, %406 : vector<8x128xi32>
    %408 = arith.andi %405, %407 : vector<8x128xi1>
    %cst_123 = arith.constant 0.000000e+00 : f32
    %409 = vector.broadcast %141 : f32 to vector<8x128xf32>
    %410 = vector.broadcast %cst_123 : f32 to vector<8x128xf32>
    %411 = arith.select %408, %409, %410 : vector<8x128xi1>, vector<8x128xf32>
    %412 = arith.addf %403, %411 : vector<8x128xf32>
    %c1_i32_124 = arith.constant 1 : i32
    %413 = vector.broadcast %c1_i32_124 : i32 to vector<8x128xi32>
    %414 = arith.cmpi eq, %365, %413 : vector<8x128xi32>
    %c1_i32_125 = arith.constant 1 : i32
    %415 = vector.broadcast %c1_i32_125 : i32 to vector<8x128xi32>
    %416 = arith.cmpi eq, %366, %415 : vector<8x128xi32>
    %417 = arith.andi %414, %416 : vector<8x128xi1>
    %cst_126 = arith.constant 0.000000e+00 : f32
    %418 = vector.broadcast %200 : f32 to vector<8x128xf32>
    %419 = vector.broadcast %cst_126 : f32 to vector<8x128xf32>
    %420 = arith.select %417, %418, %419 : vector<8x128xi1>, vector<8x128xf32>
    %421 = arith.addf %412, %420 : vector<8x128xf32>
    %c1_i32_127 = arith.constant 1 : i32
    %422 = vector.broadcast %c1_i32_127 : i32 to vector<8x128xi32>
    %423 = arith.cmpi eq, %365, %422 : vector<8x128xi32>
    %c2_i32_128 = arith.constant 2 : i32
    %424 = vector.broadcast %c2_i32_128 : i32 to vector<8x128xi32>
    %425 = arith.cmpi eq, %366, %424 : vector<8x128xi32>
    %426 = arith.andi %423, %425 : vector<8x128xi1>
    %cst_129 = arith.constant 0.000000e+00 : f32
    %427 = vector.broadcast %259 : f32 to vector<8x128xf32>
    %428 = vector.broadcast %cst_129 : f32 to vector<8x128xf32>
    %429 = arith.select %426, %427, %428 : vector<8x128xi1>, vector<8x128xf32>
    %430 = arith.addf %421, %429 : vector<8x128xf32>
    %c1_i32_130 = arith.constant 1 : i32
    %431 = vector.broadcast %c1_i32_130 : i32 to vector<8x128xi32>
    %432 = arith.cmpi eq, %365, %431 : vector<8x128xi32>
    %c3_i32_131 = arith.constant 3 : i32
    %433 = vector.broadcast %c3_i32_131 : i32 to vector<8x128xi32>
    %434 = arith.cmpi eq, %366, %433 : vector<8x128xi32>
    %435 = arith.andi %432, %434 : vector<8x128xi1>
    %cst_132 = arith.constant 0.000000e+00 : f32
    %436 = vector.broadcast %318 : f32 to vector<8x128xf32>
    %437 = vector.broadcast %cst_132 : f32 to vector<8x128xf32>
    %438 = arith.select %435, %436, %437 : vector<8x128xi1>, vector<8x128xf32>
    %439 = arith.addf %430, %438 : vector<8x128xf32>
    %c2_i32_133 = arith.constant 2 : i32
    %440 = vector.broadcast %c2_i32_133 : i32 to vector<8x128xi32>
    %441 = arith.cmpi eq, %365, %440 : vector<8x128xi32>
    %c0_i32_134 = arith.constant 0 : i32
    %442 = vector.broadcast %c0_i32_134 : i32 to vector<8x128xi32>
    %443 = arith.cmpi eq, %366, %442 : vector<8x128xi32>
    %444 = arith.andi %441, %443 : vector<8x128xi1>
    %cst_135 = arith.constant 0.000000e+00 : f32
    %445 = vector.broadcast %145 : f32 to vector<8x128xf32>
    %446 = vector.broadcast %cst_135 : f32 to vector<8x128xf32>
    %447 = arith.select %444, %445, %446 : vector<8x128xi1>, vector<8x128xf32>
    %448 = arith.addf %439, %447 : vector<8x128xf32>
    %c2_i32_136 = arith.constant 2 : i32
    %449 = vector.broadcast %c2_i32_136 : i32 to vector<8x128xi32>
    %450 = arith.cmpi eq, %365, %449 : vector<8x128xi32>
    %c1_i32_137 = arith.constant 1 : i32
    %451 = vector.broadcast %c1_i32_137 : i32 to vector<8x128xi32>
    %452 = arith.cmpi eq, %366, %451 : vector<8x128xi32>
    %453 = arith.andi %450, %452 : vector<8x128xi1>
    %cst_138 = arith.constant 0.000000e+00 : f32
    %454 = vector.broadcast %204 : f32 to vector<8x128xf32>
    %455 = vector.broadcast %cst_138 : f32 to vector<8x128xf32>
    %456 = arith.select %453, %454, %455 : vector<8x128xi1>, vector<8x128xf32>
    %457 = arith.addf %448, %456 : vector<8x128xf32>
    %c2_i32_139 = arith.constant 2 : i32
    %458 = vector.broadcast %c2_i32_139 : i32 to vector<8x128xi32>
    %459 = arith.cmpi eq, %365, %458 : vector<8x128xi32>
    %c2_i32_140 = arith.constant 2 : i32
    %460 = vector.broadcast %c2_i32_140 : i32 to vector<8x128xi32>
    %461 = arith.cmpi eq, %366, %460 : vector<8x128xi32>
    %462 = arith.andi %459, %461 : vector<8x128xi1>
    %cst_141 = arith.constant 0.000000e+00 : f32
    %463 = vector.broadcast %263 : f32 to vector<8x128xf32>
    %464 = vector.broadcast %cst_141 : f32 to vector<8x128xf32>
    %465 = arith.select %462, %463, %464 : vector<8x128xi1>, vector<8x128xf32>
    %466 = arith.addf %457, %465 : vector<8x128xf32>
    %c2_i32_142 = arith.constant 2 : i32
    %467 = vector.broadcast %c2_i32_142 : i32 to vector<8x128xi32>
    %468 = arith.cmpi eq, %365, %467 : vector<8x128xi32>
    %c3_i32_143 = arith.constant 3 : i32
    %469 = vector.broadcast %c3_i32_143 : i32 to vector<8x128xi32>
    %470 = arith.cmpi eq, %366, %469 : vector<8x128xi32>
    %471 = arith.andi %468, %470 : vector<8x128xi1>
    %cst_144 = arith.constant 0.000000e+00 : f32
    %472 = vector.broadcast %322 : f32 to vector<8x128xf32>
    %473 = vector.broadcast %cst_144 : f32 to vector<8x128xf32>
    %474 = arith.select %471, %472, %473 : vector<8x128xi1>, vector<8x128xf32>
    %475 = arith.addf %466, %474 : vector<8x128xf32>
    %c3_i32_145 = arith.constant 3 : i32
    %476 = vector.broadcast %c3_i32_145 : i32 to vector<8x128xi32>
    %477 = arith.cmpi eq, %365, %476 : vector<8x128xi32>
    %c0_i32_146 = arith.constant 0 : i32
    %478 = vector.broadcast %c0_i32_146 : i32 to vector<8x128xi32>
    %479 = arith.cmpi eq, %366, %478 : vector<8x128xi32>
    %480 = arith.andi %477, %479 : vector<8x128xi1>
    %cst_147 = arith.constant 0.000000e+00 : f32
    %481 = vector.broadcast %179 : f32 to vector<8x128xf32>
    %482 = vector.broadcast %cst_147 : f32 to vector<8x128xf32>
    %483 = arith.select %480, %481, %482 : vector<8x128xi1>, vector<8x128xf32>
    %484 = arith.addf %475, %483 : vector<8x128xf32>
    %c3_i32_148 = arith.constant 3 : i32
    %485 = vector.broadcast %c3_i32_148 : i32 to vector<8x128xi32>
    %486 = arith.cmpi eq, %365, %485 : vector<8x128xi32>
    %c1_i32_149 = arith.constant 1 : i32
    %487 = vector.broadcast %c1_i32_149 : i32 to vector<8x128xi32>
    %488 = arith.cmpi eq, %366, %487 : vector<8x128xi32>
    %489 = arith.andi %486, %488 : vector<8x128xi1>
    %cst_150 = arith.constant 0.000000e+00 : f32
    %490 = vector.broadcast %238 : f32 to vector<8x128xf32>
    %491 = vector.broadcast %cst_150 : f32 to vector<8x128xf32>
    %492 = arith.select %489, %490, %491 : vector<8x128xi1>, vector<8x128xf32>
    %493 = arith.addf %484, %492 : vector<8x128xf32>
    %c3_i32_151 = arith.constant 3 : i32
    %494 = vector.broadcast %c3_i32_151 : i32 to vector<8x128xi32>
    %495 = arith.cmpi eq, %365, %494 : vector<8x128xi32>
    %c2_i32_152 = arith.constant 2 : i32
    %496 = vector.broadcast %c2_i32_152 : i32 to vector<8x128xi32>
    %497 = arith.cmpi eq, %366, %496 : vector<8x128xi32>
    %498 = arith.andi %495, %497 : vector<8x128xi1>
    %cst_153 = arith.constant 0.000000e+00 : f32
    %499 = vector.broadcast %297 : f32 to vector<8x128xf32>
    %500 = vector.broadcast %cst_153 : f32 to vector<8x128xf32>
    %501 = arith.select %498, %499, %500 : vector<8x128xi1>, vector<8x128xf32>
    %502 = arith.addf %493, %501 : vector<8x128xf32>
    %c3_i32_154 = arith.constant 3 : i32
    %503 = vector.broadcast %c3_i32_154 : i32 to vector<8x128xi32>
    %504 = arith.cmpi eq, %365, %503 : vector<8x128xi32>
    %c3_i32_155 = arith.constant 3 : i32
    %505 = vector.broadcast %c3_i32_155 : i32 to vector<8x128xi32>
    %506 = arith.cmpi eq, %366, %505 : vector<8x128xi32>
    %507 = arith.andi %504, %506 : vector<8x128xi1>
    %cst_156 = arith.constant 0.000000e+00 : f32
    %508 = vector.broadcast %356 : f32 to vector<8x128xf32>
    %509 = vector.broadcast %cst_156 : f32 to vector<8x128xf32>
    %510 = arith.select %507, %508, %509 : vector<8x128xi1>, vector<8x128xf32>
    %511 = arith.addf %502, %510 : vector<8x128xf32>
    %c4_i32 = arith.constant 4 : i32
    %512 = vector.broadcast %c4_i32 : i32 to vector<8x128xi32>
    %513 = arith.cmpi eq, %365, %512 : vector<8x128xi32>
    %c0_i32_157 = arith.constant 0 : i32
    %514 = vector.broadcast %c0_i32_157 : i32 to vector<8x128xi32>
    %515 = arith.cmpi eq, %366, %514 : vector<8x128xi32>
    %516 = arith.andi %513, %515 : vector<8x128xi1>
    %cst_158 = arith.constant 0.000000e+00 : f32
    %517 = vector.broadcast %183 : f32 to vector<8x128xf32>
    %518 = vector.broadcast %cst_158 : f32 to vector<8x128xf32>
    %519 = arith.select %516, %517, %518 : vector<8x128xi1>, vector<8x128xf32>
    %520 = arith.addf %511, %519 : vector<8x128xf32>
    %c4_i32_159 = arith.constant 4 : i32
    %521 = vector.broadcast %c4_i32_159 : i32 to vector<8x128xi32>
    %522 = arith.cmpi eq, %365, %521 : vector<8x128xi32>
    %c1_i32_160 = arith.constant 1 : i32
    %523 = vector.broadcast %c1_i32_160 : i32 to vector<8x128xi32>
    %524 = arith.cmpi eq, %366, %523 : vector<8x128xi32>
    %525 = arith.andi %522, %524 : vector<8x128xi1>
    %cst_161 = arith.constant 0.000000e+00 : f32
    %526 = vector.broadcast %242 : f32 to vector<8x128xf32>
    %527 = vector.broadcast %cst_161 : f32 to vector<8x128xf32>
    %528 = arith.select %525, %526, %527 : vector<8x128xi1>, vector<8x128xf32>
    %529 = arith.addf %520, %528 : vector<8x128xf32>
    %c4_i32_162 = arith.constant 4 : i32
    %530 = vector.broadcast %c4_i32_162 : i32 to vector<8x128xi32>
    %531 = arith.cmpi eq, %365, %530 : vector<8x128xi32>
    %c2_i32_163 = arith.constant 2 : i32
    %532 = vector.broadcast %c2_i32_163 : i32 to vector<8x128xi32>
    %533 = arith.cmpi eq, %366, %532 : vector<8x128xi32>
    %534 = arith.andi %531, %533 : vector<8x128xi1>
    %cst_164 = arith.constant 0.000000e+00 : f32
    %535 = vector.broadcast %301 : f32 to vector<8x128xf32>
    %536 = vector.broadcast %cst_164 : f32 to vector<8x128xf32>
    %537 = arith.select %534, %535, %536 : vector<8x128xi1>, vector<8x128xf32>
    %538 = arith.addf %529, %537 : vector<8x128xf32>
    %c4_i32_165 = arith.constant 4 : i32
    %539 = vector.broadcast %c4_i32_165 : i32 to vector<8x128xi32>
    %540 = arith.cmpi eq, %365, %539 : vector<8x128xi32>
    %c3_i32_166 = arith.constant 3 : i32
    %541 = vector.broadcast %c3_i32_166 : i32 to vector<8x128xi32>
    %542 = arith.cmpi eq, %366, %541 : vector<8x128xi32>
    %543 = arith.andi %540, %542 : vector<8x128xi1>
    %cst_167 = arith.constant 0.000000e+00 : f32
    %544 = vector.broadcast %360 : f32 to vector<8x128xf32>
    %545 = vector.broadcast %cst_167 : f32 to vector<8x128xf32>
    %546 = arith.select %543, %544, %545 : vector<8x128xi1>, vector<8x128xf32>
    %547 = arith.addf %538, %546 : vector<8x128xf32>
    %c5_i32 = arith.constant 5 : i32
    %548 = vector.broadcast %c5_i32 : i32 to vector<8x128xi32>
    %549 = arith.cmpi eq, %365, %548 : vector<8x128xi32>
    %c0_i32_168 = arith.constant 0 : i32
    %550 = vector.broadcast %c0_i32_168 : i32 to vector<8x128xi32>
    %551 = arith.cmpi eq, %366, %550 : vector<8x128xi32>
    %552 = arith.andi %549, %551 : vector<8x128xi1>
    %cst_169 = arith.constant 0.000000e+00 : f32
    %553 = vector.broadcast %187 : f32 to vector<8x128xf32>
    %554 = vector.broadcast %cst_169 : f32 to vector<8x128xf32>
    %555 = arith.select %552, %553, %554 : vector<8x128xi1>, vector<8x128xf32>
    %556 = arith.addf %547, %555 : vector<8x128xf32>
    %c5_i32_170 = arith.constant 5 : i32
    %557 = vector.broadcast %c5_i32_170 : i32 to vector<8x128xi32>
    %558 = arith.cmpi eq, %365, %557 : vector<8x128xi32>
    %c1_i32_171 = arith.constant 1 : i32
    %559 = vector.broadcast %c1_i32_171 : i32 to vector<8x128xi32>
    %560 = arith.cmpi eq, %366, %559 : vector<8x128xi32>
    %561 = arith.andi %558, %560 : vector<8x128xi1>
    %cst_172 = arith.constant 0.000000e+00 : f32
    %562 = vector.broadcast %246 : f32 to vector<8x128xf32>
    %563 = vector.broadcast %cst_172 : f32 to vector<8x128xf32>
    %564 = arith.select %561, %562, %563 : vector<8x128xi1>, vector<8x128xf32>
    %565 = arith.addf %556, %564 : vector<8x128xf32>
    %c5_i32_173 = arith.constant 5 : i32
    %566 = vector.broadcast %c5_i32_173 : i32 to vector<8x128xi32>
    %567 = arith.cmpi eq, %365, %566 : vector<8x128xi32>
    %c2_i32_174 = arith.constant 2 : i32
    %568 = vector.broadcast %c2_i32_174 : i32 to vector<8x128xi32>
    %569 = arith.cmpi eq, %366, %568 : vector<8x128xi32>
    %570 = arith.andi %567, %569 : vector<8x128xi1>
    %cst_175 = arith.constant 0.000000e+00 : f32
    %571 = vector.broadcast %305 : f32 to vector<8x128xf32>
    %572 = vector.broadcast %cst_175 : f32 to vector<8x128xf32>
    %573 = arith.select %570, %571, %572 : vector<8x128xi1>, vector<8x128xf32>
    %574 = arith.addf %565, %573 : vector<8x128xf32>
    %c5_i32_176 = arith.constant 5 : i32
    %575 = vector.broadcast %c5_i32_176 : i32 to vector<8x128xi32>
    %576 = arith.cmpi eq, %365, %575 : vector<8x128xi32>
    %c3_i32_177 = arith.constant 3 : i32
    %577 = vector.broadcast %c3_i32_177 : i32 to vector<8x128xi32>
    %578 = arith.cmpi eq, %366, %577 : vector<8x128xi32>
    %579 = arith.andi %576, %578 : vector<8x128xi1>
    %cst_178 = arith.constant 0.000000e+00 : f32
    %580 = vector.broadcast %364 : f32 to vector<8x128xf32>
    %581 = vector.broadcast %cst_178 : f32 to vector<8x128xf32>
    %582 = arith.select %579, %580, %581 : vector<8x128xi1>, vector<8x128xf32>
    %583 = arith.addf %574, %582 : vector<8x128xf32>
    %c6_i32 = arith.constant 6 : i32
    %584 = vector.broadcast %c6_i32 : i32 to vector<8x128xi32>
    %585 = arith.cmpi eq, %365, %584 : vector<8x128xi32>
    %c0_i32_179 = arith.constant 0 : i32
    %586 = vector.broadcast %c0_i32_179 : i32 to vector<8x128xi32>
    %587 = arith.cmpi eq, %366, %586 : vector<8x128xi32>
    %588 = arith.andi %585, %587 : vector<8x128xi1>
    %cst_180 = arith.constant 0.000000e+00 : f32
    %589 = vector.broadcast %55 : f32 to vector<8x128xf32>
    %590 = vector.broadcast %cst_180 : f32 to vector<8x128xf32>
    %591 = arith.select %588, %589, %590 : vector<8x128xi1>, vector<8x128xf32>
    %592 = arith.addf %583, %591 : vector<8x128xf32>
    %c0_181 = arith.constant 0 : index
    %c0_182 = arith.constant 0 : index
    %c0_183 = arith.constant 0 : index
    %593 = vector.load %arg3[%c0_181, %c0_182, %c0_183] : memref<1x8x128xf32, #tpu.memory_space<vmem>>, vector<1x8x128xf32>
    %594 = vector.shape_cast %593 : vector<1x8x128xf32> to vector<8x128xf32>
    %595 = vector.shape_cast %592 : vector<8x128xf32> to vector<1x8x128xf32>
    tpu.vector_store %arg3[%c0_181, %c0_182, %c0_183], %595 {strides = array<i32>} : memref<1x8x128xf32, #tpu.memory_space<vmem>>, vector<1x8x128xf32>,
    return
  }
  func.func @transform_0(%arg0: i32) -> (i32, i32, i32, i32) {
    %c0_i32 = arith.constant 0 : i32
    %c0_i32_0 = arith.constant 0 : i32
    %c0_i32_1 = arith.constant 0 : i32
    %c0_i32_2 = arith.constant 0 : i32
    return %arg0, %c0_i32, %c0_i32_0, %c0_i32_1 : i32, i32, i32, i32
  }
  func.func @transform_1(%arg0: i32) -> (i32, i32, i32, i32) {
    %c0_i32 = arith.constant 0 : i32
    %c0_i32_0 = arith.constant 0 : i32
    %c0_i32_1 = arith.constant 0 : i32
    %c0_i32_2 = arith.constant 0 : i32
    return %arg0, %c0_i32, %c0_i32_0, %c0_i32_1 : i32, i32, i32, i32
  }
  func.func @transform_2(%arg0: i32) -> (i32, i32, i32) {
    %c0_i32 = arith.constant 0 : i32
    %c0_i32_0 = arith.constant 0 : i32
    %c0_i32_1 = arith.constant 0 : i32
    return %arg0, %c0_i32, %c0_i32_0 : i32, i32, i32
  }
}

</mosaic_0001>

<bundles_post_ra>
// kernel: dc_ce_biou_loss.1
= control target key start
LH: loop header
LB: loop body
LE: loop exit
PB: predicated region body
PF: predicated region fallthrough
CT: control target
= control target key end

     0   :  { %7 = vsyncpa [#allocation3], 0  ;;  %s6108_s0 = inlined_call_operand.hbm [shape: f32[2,4,16,16], index: 0, kind: input, shape index: {}]   ;;  %s6109_s1 = inlined_call_operand.hbm [shape: s32[2,1,16,16], index: 1, kind: input, shape index: {}]   ;;  %s6110_s2 = inlined_call_operand.vmem [shape: f32[2,8,128], index: 2, kind: output, shape index: {}]  }
   0x1   :  { %9 = vsyncpa [#allocation3 + $0x1], 0 }
   0x2   :  { %10 = vsyncpa [#allocation5], 0 }
   0x3   :  { %12 = vsyncpa [#allocation5 + $0x1], 0  ;;  %s5064_s9 = smov 0   ;;  %s5066_s10 = smov 0  }
   0x4   :  { %s5068_s11 = smov 0   ;;  %s5070_s12 = smov 0  }
   0x5 LB: > { %s5083_s13 = sadd.s32 4294967295, %s5041_s12   ;;  %s5086_s14 = sadd.s32 1, %s5041_s12   ;;  %s5041_s12 = sphi %s5070_s12, %s6130_s12   ;;  %s5037_s11 = sphi %s5068_s11, %s6129_s11   ;;  %s5033_s10 = sphi %s5066_s10, %s6128_s10   ;;  %s5029_s9 = sphi %s5064_s9, %s6127_s9  }
   0x6   : > { %s22_s15 = ssub.s32 %s5041_s12, %s5086_s14  ;;  %s25_s16 = sadd.s32 1, %s5037_s11 }
   0x7   : > { %p23_p0 = scmp.eq.s32.totalorder %s22_s15, 0  ;;  %p32_p1 = scmp.ne.s32.totalorder %s5037_s11, %s5033_s10 }
   0x8   : > { %p33_p2 = scmp.eq.s32.totalorder %s5041_s12, 0  ;;  %p38_p3 = scmp.ne.s32.totalorder %s5033_s10, %s5029_s9 }
   0x9   : > { %s5096_s17 = scalar_select %p23_p0, %s5037_s11, %s25_s16  }
   0xa   : > { %p34_p4 = por %p33_p2, %p32_p1  ;;  %p39_p5 = scmp.eq.s32.totalorder %s5083_s13, 0 }
   0xb   : > { %p4882_p6 = scmp.lt.s32.totalorder %s5041_s12, 2  ;;  %s5105_s19 = sand.u32 1, %s5037_s11  }
   0xc   : > { %p5100_p7 = por %p39_p5, %p38_p3  ;;  %s4055_s20 = sshll.u32 %s5105_s19, 6 }
   0xd   : > { %s4215_s21 = sshll.u32 %s5041_s12, 10  ;;  %s118_s25 = scalar_lea.vmem [#allocation2], %s4055_s20 }
   0xe   : > { %s6116_s18 = scalar_select %p5100_p7, 1, 0 }
   0xf   : > { %s5112_s24 = scalar_lea.hbm %s6108_s0, %s4215_s21  ;;  %s125_s26 = sshll.u32 %s118_s25, 4  ;;  %s5114_s26 = int_to_ptr.vmem [resolvable:$true] %s125_s26 }
  0x10   : > { %p5116_p8 = pnand %p4882_p6, %p34_p4  ;;  %s115_s28 = scalar_lea.sflag [#allocation3], %s5105_s19 }
  0x11   : > { %s4943_s29 = scalar_lea.hbm %s5112_s24, 1024  ;;  %s4948_s4 = scalar_lea.hbm %s6108_s0, 2048 }
  0x12   : > { %p4944_p10 = scmp.ne.s32.totalorder %s5112_s24, %s4943_s29  ;;  %p4945_p11 = pneg %p5116_p8 }
  0x13   : > { %p4949_p0 = scmp.lt.u32.totalorder %s5112_s24, %s6108_s0  ;;  %p4950_p1 = scmp.lt.u32.totalorder %s4948_s4, %s4943_s29 }
  0x14   : > { %p4946_p12 = pnand %p4945_p11, %p4944_p10  ;;  %p4952_p3 = scmp.lt.u32.totalorder %s4943_s29, %s5112_s24 }
  0x15   : > { %p4951_p2 = por %p4950_p1, %p4949_p0 }
  0x16   : > { %p4947_p13 = pneg %p4946_p12 }
  0x17   : > { %p4953_p4 = por %p4952_p3, %p4951_p2 }
  0x19   : > { %p4954_p5 = pnand %p4953_p4, %p4947_p13 }
  0x1b   : > { %4957 = shalt.err (!%p4954_p5)
}
  0x1c   : > { %s4958_s7 = scalar_lea.vmem %s5114_s26, 1024  ;;  %s5043_s8 = smov [#allocation2]  }
  0x1d   : > { %p4959_p6 = scmp.ne.s32.totalorder %s5114_s26, %s4958_s7  ;;  %s4963_s9 = sshll.u32 %s5043_s8, 4  ;;  %s4964_s9 = int_to_ptr.vmem [resolvable:$false] %s4963_s9 }
  0x1e   : > { %s4965_s15 = scalar_lea.vmem %s4964_s9, 2048  ;;  %p4966_p9 = scmp.lt.s32.totalorder %s5114_s26, %s4964_s9 }
  0x1f   : > { %p4961_p10 = pnand %p4959_p6, %p4945_p11  ;;  %p4967_p0 = scmp.lt.s32.totalorder %s4965_s15, %s4958_s7 }
  0x21   : > { %p4962_p12 = pneg %p4961_p10  ;;  %p4968_p1 = por %p4967_p0, %p4966_p9 }
  0x23   : > { %p4969_p2 = pnand %p4968_p1, %p4962_p12 }
  0x25   : > { %4972 = shalt.err (!%p4969_p2)
}
  0x26   : > { %s5044_s16 = smov 128   ;;  %s5045_s20 = smov 8  }
  0x27   : > { %4878 = dma.hbm_to_vmem [thread:$0]  (!%p5116_p8), %s5112_s24, 1024, %s5114_s26, %s115_s28, %s5044_s16, %s5044_s16, %s5045_s20  }
  0x28   : > { %p154_p9 = scmp.lt.s32.totalorder %s5041_s12, 3  ;;  %s4058_s21 = sshll.u32 %s5105_s19, 4 }
  0x29   : > { %s4216_s22 = sshll.u32 %s5041_s12, 8  ;;  %p6118_p13 = scmp.ge.s32.totalorder %s5041_s12, 1 }
  0x2a   : > { %s5164_s30 = scalar_lea.hbm %s6109_s1, %s4216_s22  ;;  %s139_s3 = scalar_lea.vmem [#allocation4], %s4058_s21 }
  0x2b   : > { %p5157_p3 = pnand %p6118_p13, %p154_p9  ;;  %s146_s4 = sshll.u32 %s139_s3, 4  ;;  %s5166_s4 = int_to_ptr.vmem [resolvable:$true] %s146_s4 }
  0x2c   : > { %s136_s24 = scalar_lea.sflag [#allocation5], %s5105_s19  ;;  %s4973_s26 = scalar_lea.hbm %s5164_s30, 256 }
  0x2d   : > { %p4974_p4 = scmp.ne.s32.totalorder %s5164_s30, %s4973_s26  ;;  %s4978_s5 = scalar_lea.hbm %s6109_s1, 512 }
  0x2e   : > { %p4979_p10 = scmp.lt.u32.totalorder %s5164_s30, %s6109_s1  ;;  %p4980_p12 = scmp.lt.u32.totalorder %s4978_s5, %s4973_s26 }
  0x2f   : > { %p4976_p5 = pnand %p4974_p4, %p4945_p11  ;;  %p4982_p1 = scmp.lt.u32.totalorder %s4973_s26, %s5164_s30 }
  0x30   : > { %p4981_p0 = por %p4980_p12, %p4979_p10 }
  0x31   : > { %p4977_p6 = pneg %p4976_p5 }
  0x32   : > { %p4983_p2 = por %p4982_p1, %p4981_p0 }
  0x34   : > { %p4984_p9 = pnand %p4983_p2, %p4977_p6 }
  0x36   : > { %4987 = shalt.err (!%p4984_p9)
}
  0x37   : > { %s4988_s8 = scalar_lea.vmem %s5166_s4, 256  ;;  %s5046_s9 = smov [#allocation4]  }
  0x38   : > { %p4989_p13 = scmp.ne.s32.totalorder %s5166_s4, %s4988_s8  ;;  %s4993_s15 = sshll.u32 %s5046_s9, 4  ;;  %s4994_s15 = int_to_ptr.vmem [resolvable:$false] %s4993_s15 }
  0x39   : > { %s4995_s21 = scalar_lea.vmem %s4994_s15, 512  ;;  %p4996_p7 = scmp.lt.s32.totalorder %s5166_s4, %s4994_s15 }
  0x3a   : > { %p4991_p4 = pnand %p4989_p13, %p4945_p11  ;;  %p4997_p10 = scmp.lt.s32.totalorder %s4995_s21, %s4988_s8 }
  0x3c   : > { %p4992_p5 = pneg %p4991_p4  ;;  %p4998_p12 = por %p4997_p10, %p4996_p7 }
  0x3e   : > { %p4999_p0 = pnand %p4998_p12, %p4992_p5 }
  0x40   : > { %5002 = shalt.err (!%p4999_p0)
}
  0x41   : > { %4881 = dma.hbm_to_vmem [thread:$0]  (!%p5116_p8), %s5164_s30, 256, %s5166_s4, %s136_s24, %s5044_s16, %s5044_s16, %s5045_s20  }
  0x42   : > { %158 = sbr.rel (%p5157_p3) target bundleno = 3880 (0xf28), region = 28  ;;  %s160_s22 = sand.u32 (!%p5157_p3), 1, %s5033_s10  }
  0x43   : > { %s4062_s25 = sshll.u32 (!%p5157_p3), %s160_s22, 6  ;;  %s161_s29 = scalar_lea.sflag (!%p5157_p3), [#allocation3], %s160_s22 }
  0x44   : > { %s5200_s3 = scalar_lea.vmem (!%p5157_p3), [#allocation2], %s4062_s25  ;;  %p6120_p7 = scmp.ne.s32.totalorder (!%p5157_p3), %s6116_s18, 0 }
  0x49   : > { %5020 = dma.done.wait (%p6120_p7), %s161_s29, 1024  }
  0x4a   : > { %5022 = vsyncadd (%p6120_p7), %s161_s29, 4294966272  ;;  %s4063_s19 = sshll.u32 %s160_s22, 4  ;;  %s170_s27 = scalar_lea.sflag [#allocation5], %s160_s22 }
  0x4b   : > { %s173_s26 = scalar_lea.vmem [#allocation4], %s4063_s19 }
  0x4c   : > { %5024 = dma.done.wait (%p6120_p7), %s170_s27, 256  }
  0x4d   : > { %5026 = vsyncadd (%p6120_p7), %s170_s27, 4294967040  ;;  %v306_v0 = vlaneseq  ;;  %vm293_vm0 = vcmask 130048   ;;  %v5219_v6 = vld [vmem:[%s173_s26] sm:$0xff]  ;;  %v5221_v7 = vld [vmem:[%s173_s26 + $0x8] sm:$0xff]  ;;  %v6112_v8 = vmov 0.0   ;;  %p198_p8 = scmp.lt.s32.totalorder %s5083_s13, 1 }
  0x4e   : > { %v5236_v13 = vcvt.s32.f32 %v5219_v6  ;;  %v5239_v14 = vcvt.s32.f32 %v5221_v7  ;;  %v6114_v19 = vmov 1.0|1.0   ;;  %v5334_v47 = vld [vmem:[%s5200_s3] sm:$0xff]  ;;  %v5337_v48 = vld [vmem:[%s5200_s3 + $0x8] sm:$0xff]  ;;  %v5340_v49 = vld [vmem:[%s5200_s3 + $0x10] sm:$0xff]  ;;  %vm245_vm13 = vcmp.eq.s32.totalorder %v5219_v6, 0 }
  0x4f   : > { %v5210_v1 = vshrl.u32 %v306_v0, 7  ;;  %v5212_v2 = vand.u32 127, %v306_v0  ;;  %v5343_v50 = vld [vmem:[%s5200_s3 + $0x18] sm:$0xff]  ;;  %v215_v51 = vmax.f32 %v5334_v47, %v5340_v49  ;;  %v5348_v52 = vld [vmem:[%s5200_s3 + $0x20] sm:$0xff]  ;;  %v5351_v53 = vld [vmem:[%s5200_s3 + $0x28] sm:$0xff]  ;;  %vm246_vm14 = vcmp.eq.s32.totalorder %v5221_v7, 0 }
  0x50   : > { %v4657_v15 = vpack.c.bf16 %v5239_v14, %v5236_v13  ;;  %v216_v54 = vmax.f32 %v5337_v48, %v5343_v50  ;;  %v5357_v56 = vld [vmem:[%s5200_s3 + $0x30] sm:$0xff]  ;;  %v5360_v57 = vld [vmem:[%s5200_s3 + $0x38] sm:$0xff]  ;;  %vm251_vm15 = vcmp.eq.s32.totalorder %v5219_v6, 1  ;;  %s6132_s13 = smov (!%p198_p8, %s5083_s13), 1 }
  0x51   : > { %v311_v3 = vadd.s32 1, %v5212_v2  ;;  %v318_v4 = vadd.s32 1, %v5210_v1  ;;  %v308_v5 = vadd.s32 8, %v5210_v1  ;;  %vm332_vm10 = vcmp.eq.s32.totalorder %v5210_v1, 0 }
  0x52   : > { %4658 = vmatprep.subr.bf16.mxu0 %v4657_v15  ;;  %4662 = vmatprep.subr.bf16.mxu1 %v4657_v15  ;;  %v5283_v21 = vsel %vm332_vm10, 1e+30, %v6112_v8  ;;  %vm340_vm11 = vcmp.eq.s32.totalorder %v5212_v2, 0  ;;  %vm342_vm12 = vcmp.eq.s32.totalorder %v5212_v2, 15  ;;  %v217_v55 = vmax.f32 %v215_v51, %v5348_v52 }
  0x53   : > { %vm312_vm1 = vcmp.eq.s32.totalorder %v5210_v1, %v311_v3  ;;  %vm320_vm2 = vcmp.eq.s32.totalorder %v5212_v2, %v318_v4  ;;  %vm313_vm3 = vcmp.eq.s32.totalorder %v308_v5, %v311_v3  ;;  %vm326_vm4 = vcmp.eq.s32.totalorder %v318_v4, %v5212_v2  ;;  %4660 = vmatpush3.bf16.msra.mxu0 %v4657_v15 }
  0x54   : > { %v5224_v9 = vsel %vm312_vm1, 1.0, %v6112_v8  ;;  %v5227_v10 = vsel %vm320_vm2, 1.0, %v6112_v8  ;;  %vm5231_vm5 = vmpackc.low %vm313_vm3, %vm312_vm1  ;;  %v319_v12 = vadd.s32 1, %v308_v5  ;;  %4664 = vmatpush3.bf16.msra.mxu1 %v4657_v15  ;;  %v5255_v17 = vsel %vm313_vm3, 1.0, %v6112_v8 }
  0x55   : > { %4381 = vmatprep.mubr.msk.f32.mxu0 %vm293_vm0, %v5224_v9  ;;  %4388 = vmatprep.mubr.msk.f32.mxu1 %vm293_vm0, %v5227_v10  ;;  %vm337_vm9 = vcmp.eq.s32.totalorder %v308_v5, 15  ;;  %v5302_v32 = vsel %vm340_vm11, 1e+30, %v6112_v8  ;;  %v5305_v33 = vsel %vm342_vm12, 1e+30, %v6112_v8  ;;  %v218_v58 = vmax.f32 %v216_v54, %v5351_v53 }
  0x56   : > { %vm327_vm6 = vcmp.eq.s32.totalorder %v319_v12, %v5212_v2  ;;  %vm321_vm7 = vcmp.eq.s32.totalorder %v5212_v2, %v319_v12  ;;  %4382 = vmatmul.mubr.msk.f32.vlgmr.msra.gmra.mrb[0].mxu0 %vm293_vm0, %v5255_v17  ;;  %4670 = vmatprep.subr.msk.bf16.mxu1 %vm5231_vm5, %v6114_v19  ;;  %v5278_v20 = vsel %vm337_vm9, 1e+30, %v6112_v8  ;;  %v5364_v59 = vmax.f32 %v217_v55, %v5357_v56 }
  0x57   : > { %vm5249_vm8 = vmpackc.low %vm327_vm6, %vm326_vm4  ;;  %v5258_v18 = vsel %vm321_vm7, 1.0, %v6112_v8  ;;  %v5367_v60 = vmax.f32 %v218_v58, %v5360_v57  ;;  %vm252_vm1 = vcmp.eq.s32.totalorder %v5221_v7, 1  ;;  %vm259_vm2 = vcmp.eq.s32.totalorder %v5219_v6, 2 }
  0x58   : > { %4389 = vmatmul.mubr.msk.f32.vlgmr.msra.gmra.mrb[0].mxu1 %vm293_vm0, %v5258_v18  ;;  %4666 = vmatprep.subr.msk.bf16.mxu0 %vm5249_vm8, %v6114_v19  ;;  %v221_v61 = vsub.f32 %v5334_v47, %v5364_v59  ;;  %v227_v62 = vsub.f32 %v5340_v49, %v5364_v59  ;;  %v233_v5 = vsub.f32 %v5348_v52, %v5364_v59  ;;  %vm260_vm3 = vcmp.eq.s32.totalorder %v5221_v7, 2 }
  0x59   : > { %4668 = vmatpush3.bf16.msk.msra.mxu0 %vm5249_vm8, %v6114_v19  ;;  %4672 = vmatpush3.bf16.msk.msra.mxu1 %vm5231_vm5, %v6114_v19  ;;  %v222_v63 = vsub.f32 %v5337_v48, %v5367_v60  ;;  %v228_v0 = vsub.f32 %v5343_v50, %v5367_v60  ;;  %v234_v12 = vsub.f32 %v5351_v53, %v5367_v60  ;;  %vm267_vm4 = vcmp.eq.s32.totalorder %v5219_v6, 3 }
  0x5a   : > { %v223_v3 = vmul.f32 1.442695, %v221_v61  ;;  %v229_v4 = vmul.f32 1.442695, %v227_v62  ;;  %vm268_vm6 = vcmp.eq.s32.totalorder %v5221_v7, 3 }
  0x5b   : > { %v225_v15 = vmul.f32 1.442695, %v222_v63 }
  0x5c   : > { %4919 = vpow2.f32 %v223_v3 }
  0x5d   : > { %4921 = vpow2.f32 %v225_v15 }
  0x5e   : > { %4923 = vpow2.f32 %v229_v4 }
 0x129   : > { %v4383_v22 = vpop.f32.mrb[0].mxu0 }
 0x12a   : > { %v418_v25 = vpop.f32.mrb[1].mxu0 }
 0x12b   : > { %v4390_v23 = vpop.f32.mrb[0].mxu1  ;;  %v419_v27 = vadd.f32 %v418_v25, %v5283_v21  ;;  %v237_v25 = vmul.f32 1.442695, %v234_v12 }
 0x12c   : > { %v505_v24 = vadd.f32 %v4390_v23, %v5278_v20  ;;  %v499_v26 = vpop.f32.mrb[1].mxu1  ;;  %v235_v23 = vmul.f32 1.442695, %v233_v5 }
 0x12d   : > { %v508_v29 = vmin.f32 %v419_v27, %v499_v26  ;;  %v240_v26 = vsub.f32 %v5360_v57, %v5367_v60 }
 0x12e   : > { %v509_v28 = vmin.f32 %v4383_v22, %v505_v24  ;;  %v231_v22 = vmul.f32 1.442695, %v228_v0  ;;  %v239_v24 = vsub.f32 %v5357_v56, %v5364_v59 }
 0x12f   : > { %v510_v30 = vmin.f32 %v5236_v13, %v508_v29  ;;  %v4920_v29 = vpop.eup %4919 }
 0x130   : > { %v511_v31 = vmin.f32 %v5239_v14, %v509_v28  ;;  %v241_v27 = vmul.f32 1.442695, %v239_v24  ;;  %4925 = vpow2.f32 %v231_v22  ;;  %v243_v28 = vmul.f32 1.442695, %v240_v26 }
 0x131   : > { %4395 = vmatprep.mubr.msk.f32.mxu0 %vm293_vm0, %v510_v30  ;;  %4402 = vmatprep.mubr.msk.f32.mxu1 %vm293_vm0, %v510_v30  ;;  %4927 = vpow2.f32 %v235_v23 }
 0x132   : > { %4396 = vmatmul.mubr.msk.f32.vlgmr.msra.gmra.mrb[2].mxu0 %vm293_vm0, %v511_v31  ;;  %4403 = vmatmul.mubr.msk.f32.vlgmr.msra.gmra.mrb[2].mxu1 %vm293_vm0, %v511_v31  ;;  %4929 = vpow2.f32 %v237_v25 }
 0x133   : > { %4409 = vmatprep.mubr.msk.f32.mxu0 %vm293_vm0, %v5224_v9  ;;  %4416 = vmatprep.mubr.msk.f32.mxu1 %vm293_vm0, %v5227_v10  ;;  %4931 = vpow2.f32 %v241_v27 }
 0x134   : > { %4933 = vpow2.f32 %v243_v28 }
 0x205   : > { %v4397_v34 = vpop.f32.mrb[2].mxu0  ;;  %v4404_v35 = vpop.f32.mrb[2].mxu1 }
 0x206   : > { %v590_v36 = vadd.f32 %v4397_v34, %v5302_v32  ;;  %v665_v37 = vadd.f32 %v4404_v35, %v5305_v33  ;;  %v584_v38 = vpop.f32.mrb[3].mxu0  ;;  %v659_v39 = vpop.f32.mrb[3].mxu1 }
 0x207   : > { %v585_v40 = vadd.f32 %v584_v38, %v5302_v32  ;;  %v660_v41 = vadd.f32 %v659_v39, %v5305_v33 }
 0x208   : > { %v669_v42 = vmin.f32 %v590_v36, %v665_v37 }
 0x209   : > { %v668_v43 = vmin.f32 %v585_v40, %v660_v41 }
 0x20a   : > { %v5311_v44 = vmin.f32 %v511_v31, %v669_v42 }
 0x20b   : > { %v5313_v45 = vmin.f32 %v510_v30, %v668_v43  ;;  %v4922_v30 = vpop.eup %4921 }
 0x20c   : > { %v4924_v31 = vpop.eup %4923 }
 0x20d   : > { %v4673_v46 = vpack.c.bf16 %v5311_v44, %v5313_v45  ;;  %v4926_v34 = vpop.eup %4925  ;;  %v249_v35 = vadd.f32 %v4924_v31, %v4920_v29 }
 0x20e   : > { %v4928_v36 = vpop.eup %4927  ;;  %v250_v37 = vadd.f32 %v4926_v34, %v4922_v30 }
 0x20f   : > { %4674 = vmatprep.subr.bf16.mxu0 %v4673_v46  ;;  %4678 = vmatprep.subr.bf16.mxu1 %v4673_v46  ;;  %v4930_v38 = vpop.eup %4929  ;;  %v257_v39 = vadd.f32 %v4928_v36, %v249_v35  ;;  %v253_v35 = vsel %vm251_vm15, %v5340_v49, 0.0 }
 0x210   : > { %4676 = vmatpush3.bf16.msra.mxu0 %v4673_v46  ;;  %4680 = vmatpush3.bf16.msra.mxu1 %v4673_v46  ;;  %v5385_v40 = vpop.eup %4931  ;;  %v258_v41 = vadd.f32 %v4930_v38, %v250_v37 }
 0x211   : > { %4682 = vmatprep.subr.msk.bf16.mxu0 %vm5249_vm8, %v6114_v19  ;;  %4686 = vmatprep.subr.msk.bf16.mxu1 %vm5231_vm5, %v6114_v19  ;;  %v5387_v42 = vpop.eup %4933  ;;  %v265_v43 = vadd.f32 %v5385_v40, %v257_v39 }
 0x212   : > { %v266_v46 = vadd.f32 %v5387_v42, %v258_v41 }
 0x213   : > { %4410 = vmatmul.mubr.msk.f32.vlgmr.msra.gmra.mrb[4].mxu0 %vm293_vm0, %v5255_v17  ;;  %4417 = vmatmul.mubr.msk.f32.vlgmr.msra.gmra.mrb[4].mxu1 %vm293_vm0, %v5258_v18  ;;  %4935 = vrcp.f32 %v265_v43 }
 0x214   : > { %4684 = vmatpush3.bf16.msk.msra.mxu0 %vm5249_vm8, %v6114_v19  ;;  %4688 = vmatpush3.bf16.msk.msra.mxu1 %vm5231_vm5, %v6114_v19  ;;  %4937 = vrcp.f32 %v266_v46 }
 0x215   : > { %4939 = vlog2.f32 %v265_v43 }
 0x216   : > { %4941 = vlog2.f32 %v266_v46 }
 0x21d   : > { %v5391_v51 = vpop.eup %4935 }
 0x21e   : > { %v5393_v54 = vpop.eup %4937  ;;  %v5396_v55 = vmul.f32 %v5391_v51, %v4920_v29  ;;  %v5450_v27 = vmul.f32 %v5391_v51, %v4928_v36  ;;  %v248_v29 = vsel %vm246_vm14, %v5337_v48, 0.0  ;;  %v254_v48 = vsel %vm252_vm1, %v5343_v50, 0.0 }
 0x21f   : > { %v5399_v58 = vmul.f32 %v5393_v54, %v4922_v30  ;;  %v5453_v28 = vmul.f32 %v5393_v54, %v4930_v38  ;;  %v247_v30 = vsel %vm245_vm13, %v5334_v47, 0.0  ;;  %v256_v37 = vadd.f32 %v254_v48, %v248_v29  ;;  %v4940_v39 = vpop.eup %4939 }
 0x220   : > { %v5472_v38 = vsel %vm245_vm13, 1.0, %v6112_v8  ;;  %v5475_v47 = vsel %vm246_vm14, 1.0, %v6112_v8  ;;  %v255_v49 = vadd.f32 %v253_v35, %v247_v30  ;;  %v4942_v46 = vpop.eup %4941  ;;  %v261_v50 = vsel %vm259_vm2, %v5348_v52, 0.0 }
 0x221   : > { %v4689_v61 = vpack.c.bf16 %v5399_v58, %v5396_v55  ;;  %v994_v41 = vmul.f32 %v5472_v38, %v5396_v55  ;;  %v995_v43 = vmul.f32 %v5475_v47, %v5399_v58  ;;  %v270_v52 = vsel %vm268_vm6, %v5360_v57, 0.0 }
 0x223   : > { %4690 = vmatprep.subr.bf16.mxu0 %v4689_v61  ;;  %4694 = vmatprep.subr.bf16.mxu1 %v4689_v61 }
 0x2e6   : > { %v4411_v62 = vpop.f32.mrb[4].mxu0  ;;  %v4418_v63 = vpop.f32.mrb[4].mxu1 }
 0x2e7   : > { %v819_v0 = vadd.f32 %v4418_v63, %v5278_v20  ;;  %v738_v3 = vpop.f32.mrb[5].mxu0  ;;  %v813_v4 = vpop.f32.mrb[5].mxu1  ;;  %v262_v63 = vsel %vm260_vm3, %v5351_v53, 0.0 }
 0x2e8   : > { %v739_v5 = vadd.f32 %v738_v3, %v5283_v21 }
 0x2e9   : > { %v823_v12 = vmin.f32 %v4411_v62, %v819_v0  ;;  %v997_v62 = vsel %vm293_vm0, %v995_v43, 0.0  ;;  %v263_v0 = vadd.f32 %v261_v50, %v255_v49 }
 0x2ea   : > { %v822_v15 = vmin.f32 %v739_v5, %v813_v4  ;;  %v264_v4 = vadd.f32 %v262_v63, %v256_v37  ;;  %v269_v5 = vsel %vm267_vm4, %v5357_v56, 0.0 }
 0x2eb   : > { %v5409_v23 = vmin.f32 %v5311_v44, %v823_v12  ;;  %v5440_v44 = vmul.f32 %v5391_v51, %v4924_v31  ;;  %v2440_v31 = vsel %vm293_vm0, %v5450_v27, 0.0  ;;  %v271_v12 = vadd.f32 %v269_v5, %v263_v0 }
 0x2ec   : > { %v5406_v22 = vmin.f32 %v5313_v45, %v822_v15  ;;  %v5443_v45 = vmul.f32 %v5393_v54, %v4926_v34  ;;  %v2441_v34 = vsel %vm293_vm0, %v5453_v28, 0.0  ;;  %v286_v15 = vmul.f32 0.6931472, %v4940_v39 }
 0x2ed   : > { %v1724_v24 = vsel %vm293_vm0, %v5440_v44, 0.0  ;;  %v2442_v36 = vadd.f32 %v2441_v34, %v2440_v31 }
 0x2ee   : > { %4423 = vmatprep.mubr.msk.f32.mxu0 %vm293_vm0, %v5406_v22  ;;  %4430 = vmatprep.mubr.msk.f32.mxu1 %vm293_vm0, %v5406_v22  ;;  %v1725_v25 = vsel %vm293_vm0, %v5443_v45, 0.0 }
 0x2ef   : > { %4424 = vmatmul.mubr.msk.f32.vlgmr.msra.gmra.mrb[6].mxu0 %vm293_vm0, %v5409_v23  ;;  %4431 = vmatmul.mubr.msk.f32.vlgmr.msra.gmra.mrb[6].mxu1 %vm293_vm0, %v5409_v23  ;;  %v1726_v26 = vadd.f32 %v1725_v25, %v1724_v24  ;;  %v288_v24 = vmul.f32 0.6931472, %v4942_v46  ;;  %v272_v25 = vadd.f32 %v270_v52, %v264_v4 }
 0x2f0   : > { %4692 = vmatpush3.bf16.msra.mxu0 %v4689_v61  ;;  %4696 = vmatpush3.bf16.msra.mxu1 %v4689_v61  ;;  %v996_v61 = vsel %vm293_vm0, %v994_v41, 0.0 }
 0x2f1   : > { %4437 = vmatprep.mubr.msk.f32.mxu0 %vm293_vm0, %v5224_v9  ;;  %4444 = vmatprep.mubr.msk.f32.mxu1 %vm293_vm0, %v5227_v10  ;;  %v998_v3 = vadd.f32 %v997_v62, %v996_v61  ;;  %v290_v53 = vadd.f32 %v288_v24, %v5367_v60 }
 0x2f2   : > { %4698 = vmatprep.subr.msk.bf16.mxu0 %vm5249_vm8, %v6114_v19  ;;  %4702 = vmatprep.subr.msk.bf16.mxu1 %vm5231_vm5, %v6114_v19 }
 0x2f3   : > { %4438 = vmatmul.mubr.msk.f32.vlgmr.msra.gmra.mrb[8].mxu0 %vm293_vm0, %v5255_v17  ;;  %4445 = vmatmul.mubr.msk.f32.vlgmr.msra.gmra.mrb[8].mxu1 %vm293_vm0, %v5258_v18  ;;  %v292_v30 = vsub.f32 %v290_v53, %v272_v25 }
 0x2f4   : > { %4700 = vmatpush3.bf16.msk.msra.mxu0 %vm5249_vm8, %v6114_v19  ;;  %4704 = vmatpush3.bf16.msk.msra.mxu1 %vm5231_vm5, %v6114_v19 }
 0x2f5   : > { %1727 = vadd.xlane.f32.xlu0 %v1726_v26  ;;  %v289_v26 = vadd.f32 %v286_v15, %v5364_v59  ;;  %v295_v34 = vsel %vm293_vm0, %v292_v30, 0.0 }
 0x2f7   : > { %v291_v29 = vsub.f32 %v289_v26, %v271_v12 }
 0x2f9   : > { %2443 = vadd.xlane.f32.xlu0 %v2442_v36  ;;  %v294_v31 = vsel %vm293_vm0, %v291_v29, 0.0 }
 0x2fa   : > { %v296_v56 = vadd.f32 %v295_v34, %v294_v31 }
 0x2fd   : > { %999 = vadd.xlane.f32.xlu0 %v998_v3 }
 0x301   : > { %297 = vadd.xlane.f32.xlu0 %v296_v56 }
 0x3c2   : > { %v4425_v35 = vpop.f32.mrb[6].mxu0  ;;  %v4432_v48 = vpop.f32.mrb[6].mxu1 }
 0x3c3   : > { %v904_v57 = vadd.f32 %v4425_v35, %v5302_v32  ;;  %v979_v36 = vadd.f32 %v4432_v48, %v5305_v33  ;;  %v898_v37 = vpop.f32.mrb[7].mxu0  ;;  %v973_v39 = vpop.f32.mrb[7].mxu1 }
 0x3c4   : > { %v899_v59 = vadd.f32 %v898_v37, %v5302_v32  ;;  %v974_v60 = vadd.f32 %v973_v39, %v5305_v33 }
 0x3c5   : > { %v983_v41 = vmin.f32 %v904_v57, %v979_v36 }
 0x3c6   : > { %v982_v43 = vmin.f32 %v899_v59, %v974_v60  ;;  %v4439_v49 = vpop.f32.mrb[8].mxu0  ;;  %v4446_v46 = vpop.f32.mrb[8].mxu1 }
 0x3c7   : > { %v985_v50 = vmin.f32 %v5409_v23, %v983_v41  ;;  %v1179_v61 = vadd.f32 %v4446_v46, %v5278_v20  ;;  %v1098_v62 = vpop.f32.mrb[9].mxu0  ;;  %v1173_v63 = vpop.f32.mrb[9].mxu1 }
 0x3c8   : > { %v984_v0 = vmin.f32 %v5406_v22, %v982_v43  ;;  %v1099_v3 = vadd.f32 %v1098_v62, %v5283_v21 }
 0x3c9   : > { %v987_v4 = vsub.f32 %v5239_v14, %v985_v50  ;;  %v1183_v5 = vmin.f32 %v4439_v49, %v1179_v61 }
 0x3ca   : > { %v986_v52 = vsub.f32 %v5236_v13, %v984_v0  ;;  %v1182_v12 = vmin.f32 %v1099_v3, %v1173_v63 }
 0x3cb   : > { %v4821_v15 = vtrunc.f32 %v987_v4  ;;  %v1185_v23 = vmin.f32 %v5399_v58, %v1183_v5 }
 0x3cc   : > { %v4819_v24 = vtrunc.f32 %v986_v52  ;;  %v1184_v25 = vmin.f32 %v5396_v55, %v1182_v12 }
 0x3cd   : > { %v4822_v26 = vcvt.f32.s32 %v4821_v15 }
 0x3ce   : > { %v4820_v53 = vcvt.f32.s32 %v4819_v24  ;;  %4451 = vmatprep.mubr.msk.f32.mxu0 %vm293_vm0, %v1184_v25  ;;  %4458 = vmatprep.mubr.msk.f32.mxu1 %vm293_vm0, %v1184_v25 }
 0x3cf   : > { %4452 = vmatmul.mubr.msk.f32.vlgmr.msra.gmra.mrb[10].mxu0 %vm293_vm0, %v1185_v23  ;;  %4459 = vmatmul.mubr.msk.f32.vlgmr.msra.gmra.mrb[10].mxu1 %vm293_vm0, %v1185_v23  ;;  %vm1663_vm7 = vcmp.eq.s32.totalorder %v4822_v26, 0  ;;  %vm2379_vm9 = vcmp.eq.s32.totalorder %v4822_v26, 1  ;;  %vm3095_vm12 = vcmp.eq.s32.totalorder %v4822_v26, 2 }
 0x3d0   : > { %vm1662_vm13 = vcmp.eq.s32.totalorder %v4820_v53, 0  ;;  %v5520_v13 = vsel %vm1663_vm7, 1.0, %v6112_v8  ;;  %vm2378_vm14 = vcmp.eq.s32.totalorder %v4820_v53, 1  ;;  %v5523_v14 = vsel %vm2379_vm9, 1.0, %v6112_v8  ;;  %4465 = vmatprep.mubr.msk.f32.mxu0 %vm293_vm0, %v5224_v9  ;;  %4472 = vmatprep.mubr.msk.f32.mxu1 %vm293_vm0, %v5227_v10 }
 0x3d1   : > { %v5530_v22 = vsel %vm1662_vm13, 1.0, %v6112_v8  ;;  %v1695_v29 = vsel %vm293_vm0, %v5520_v13, 0.0  ;;  %v5535_v30 = vsel %vm2378_vm14, 1.0, %v6112_v8  ;;  %vm3811_vm7 = vcmp.eq.s32.totalorder %v4822_v26, 3 }
 0x3d2   : > { %v1694_v31 = vsel %vm293_vm0, %v5530_v22, 0.0  ;;  %vm3094_vm9 = vcmp.eq.s32.totalorder %v4820_v53, 2  ;;  %v5540_v34 = vsel %vm3095_vm12, 1.0, %v6112_v8  ;;  %v2410_v35 = vsel %vm293_vm0, %v5535_v30, 0.0 }
 0x3d3   : > { %v1696_v56 = vadd.f32 %v1695_v29, %v1694_v31  ;;  %v2411_v48 = vsel %vm293_vm0, %v5523_v14, 0.0  ;;  %v5547_v57 = vsel %vm3094_vm9, 1.0, %v6112_v8  ;;  %v3127_v37 = vsel %vm293_vm0, %v5540_v34, 0.0 }
 0x3d4   : > { %v3126_v36 = vsel %vm293_vm0, %v5547_v57, 0.0  ;;  %vm3810_vm13 = vcmp.eq.s32.totalorder %v4820_v53, 3  ;;  %v5554_v39 = vsel %vm3811_vm7, 1.0, %v6112_v8  ;;  %v2412_v49 = vadd.f32 %v2411_v48, %v2410_v35 }
 0x3d5   : > { %1697 = vadd.xlane.f32.xlu0 %v1696_v56  ;;  %v5556_v59 = vadd.f32 %v3127_v37, %v3126_v36  ;;  %v5559_v60 = vsel %vm3810_vm13, 1.0, %v6112_v8  ;;  %v3843_v41 = vsel %vm293_vm0, %v5554_v39, 0.0  ;;  %v1021_v53 = vsel %vm293_vm0, %v5475_v47, 0.0 }
 0x3d6   : > { %v3842_v43 = vsel %vm293_vm0, %v5559_v60, 0.0  ;;  %v4129_v29 = vsel %vm251_vm15, 1.0, %v6112_v8  ;;  %v4130_v31 = vsel %vm252_vm1, 1.0, %v6112_v8  ;;  %v4158_v47 = vsel %vm260_vm3, 1.0, %v6112_v8 }
 0x3d7   : > { %v5565_v46 = vadd.f32 %v3843_v41, %v3842_v43  ;;  %v1736_v35 = vsel %vm293_vm0, %v4129_v29, 0.0  ;;  %v1737_v48 = vsel %vm293_vm0, %v4130_v31, 0.0  ;;  %v2453_v41 = vsel %vm293_vm0, %v4158_v47, 0.0 }
 0x3d8   : > { %v1738_v36 = vadd.f32 %v1737_v48, %v1736_v35  ;;  %v2427_v48 = vmul.f32 %v4158_v47, %v5453_v28  ;;  %vm3863_vm15 = vcmp.eq.s32.totalorder %v5212_v2, 2  ;;  %vm3890_vm7 = vcmp.eq.s32.totalorder %v5210_v1, 2 }
 0x3d9   : > { %2413 = vadd.xlane.f32.xlu0 %v2412_v49  ;;  %vm3864_vm1 = vmand %vm332_vm10, %vm3863_vm15 }
 0x3da   : > { %vm3891_vm9 = vmand %vm3890_vm7, %vm340_vm11 }
 0x4a2   : > { %v4453_v50 = vpop.f32.mrb[10].mxu0  ;;  %v4460_v61 = vpop.f32.mrb[10].mxu1 }
 0x4a3   : > { %v1264_v62 = vadd.f32 %v4453_v50, %v5302_v32  ;;  %v1339_v63 = vadd.f32 %v4460_v61, %v5305_v33  ;;  %v1258_v0 = vpop.f32.mrb[11].mxu0  ;;  %v1333_v3 = vpop.f32.mrb[11].mxu1 }
 0x4a4   : > { %v1259_v4 = vadd.f32 %v1258_v0, %v5302_v32  ;;  %v1334_v5 = vadd.f32 %v1333_v3, %v5305_v33 }
 0x4a5   : > { %v1343_v52 = vmin.f32 %v1264_v62, %v1339_v63 }
 0x4a6   : > { %v1342_v12 = vmin.f32 %v1259_v4, %v1334_v5 }
 0x4a7   : > { %v1345_v15 = vmin.f32 %v1185_v23, %v1343_v52  ;;  %v1020_v23 = vsel %vm293_vm0, %v5472_v38, 0.0  ;;  %v4157_v38 = vsel %vm259_vm2, 1.0, %v6112_v8  ;;  %vm3868_vm2 = vcmp.eq.s32.totalorder %v5212_v2, 3 }
 0x4a8   : > { %v1344_v24 = vmin.f32 %v1184_v25, %v1342_v12  ;;  %v4721_v25 = vpack.c.bf16 %v5443_v45, %v5440_v44  ;;  %v1022_v56 = vadd.f32 %v1021_v53, %v1020_v23  ;;  %v2452_v37 = vsel %vm293_vm0, %v4157_v38, 0.0  ;;  %vm3869_vm3 = vmand %vm332_vm10, %vm3868_vm2 }
 0x4a9   : > { %v2454_v43 = vadd.f32 %v2453_v41, %v2452_v37  ;;  %v1008_v12 = vsel %vm293_vm0, %v5396_v55, 0.0  ;;  %v2426_v35 = vmul.f32 %v4157_v38, %v5450_v27  ;;  %v2429_v37 = vsel %vm293_vm0, %v2427_v48, 0.0 }
 0x4aa   : > { %v4705_v26 = vpack.c.bf16 %v1345_v15, %v1344_v24  ;;  %1023 = vadd.xlane.f32.xlu1 %v1022_v56 }
 0x4ac   : > { %4706 = vmatprep.subr.bf16.mxu0 %v4705_v26  ;;  %4710 = vmatprep.subr.bf16.mxu1 %v4705_v26 }
 0x4ad   : > { %4708 = vmatpush3.bf16.msra.mxu0 %v4705_v26  ;;  %4712 = vmatpush3.bf16.msra.mxu1 %v4705_v26  ;;  %v1710_v26 = vmul.f32 %v4129_v29, %v5440_v44 }
 0x4ae   : > { %4714 = vmatprep.subr.msk.bf16.mxu0 %vm5249_vm8, %v6114_v19  ;;  %4718 = vmatprep.subr.msk.bf16.mxu1 %vm5231_vm5, %v6114_v19 }
 0x4af   : > { %1739 = vadd.xlane.f32.xlu1 %v1738_v36  ;;  %v1712_v23 = vsel %vm293_vm0, %v1710_v26, 0.0  ;;  %v2428_v36 = vsel %vm293_vm0, %v2426_v35, 0.0 }
 0x4b0   : > { %4466 = vmatmul.mubr.msk.f32.vlgmr.msra.gmra.mrb[12].mxu0 %vm293_vm0, %v5255_v17  ;;  %4473 = vmatmul.mubr.msk.f32.vlgmr.msra.gmra.mrb[12].mxu1 %vm293_vm0, %v5258_v18  ;;  %v2430_v41 = vadd.f32 %v2429_v37, %v2428_v36 }
 0x4b1   : > { %4716 = vmatpush3.bf16.msk.msra.mxu0 %vm5249_vm8, %v6114_v19  ;;  %4720 = vmatpush3.bf16.msk.msra.mxu1 %vm5231_vm5, %v6114_v19 }
 0x4b2   : > { %4722 = vmatprep.subr.bf16.mxu0 %v4721_v25  ;;  %4726 = vmatprep.subr.bf16.mxu1 %v4721_v25 }
 0x4b3   : > { %2455 = vadd.xlane.f32.xlu1 %v2454_v43 }
 0x583   : > { %v4467_v49 = vpop.f32.mrb[12].mxu0  ;;  %v4474_v50 = vpop.f32.mrb[12].mxu1 }
 0x584   : > { %v1493_v61 = vadd.f32 %v4474_v50, %v5278_v20  ;;  %v1412_v62 = vpop.f32.mrb[13].mxu0  ;;  %v1487_v63 = vpop.f32.mrb[13].mxu1 }
 0x585   : > { %v1413_v0 = vadd.f32 %v1412_v62, %v5283_v21  ;;  %v5649_v62 = vpop.xlane.xlu0 %1727 }
 0x586   : > { %v1497_v3 = vmin.f32 %v4467_v49, %v1493_v61 }
 0x587   : > { %v1496_v4 = vmin.f32 %v1413_v0, %v1487_v63  ;;  %v1024_v63 = vpop.xlane.xlu1 %1023 }
 0x588   : > { %v1499_v52 = vmin.f32 %v1345_v15, %v1497_v3  ;;  %v1009_v15 = vsel %vm293_vm0, %v5399_v58, 0.0 }
 0x589   : > { %v1498_v5 = vmin.f32 %v1344_v24, %v1496_v4  ;;  %v1010_v24 = vadd.f32 %v1009_v15, %v1008_v12  ;;  %v5656_v48 = vpop.xlane.xlu0 %2443 }
 0x58b   : > { %4479 = vmatprep.mubr.msk.f32.mxu0 %vm293_vm0, %v1498_v5  ;;  %4486 = vmatprep.mubr.msk.f32.mxu1 %vm293_vm0, %v1498_v5 }
 0x58c   : > { %4480 = vmatmul.mubr.msk.f32.vlgmr.msra.gmra.mrb[14].mxu0 %vm293_vm0, %v1499_v52  ;;  %4487 = vmatmul.mubr.msk.f32.vlgmr.msra.gmra.mrb[14].mxu1 %vm293_vm0, %v1499_v52 }
 0x58d   : > { %4724 = vmatpush3.bf16.msra.mxu0 %v4721_v25  ;;  %4728 = vmatpush3.bf16.msra.mxu1 %v4721_v25  ;;  %v1711_v25 = vmul.f32 %v4130_v31, %v5443_v45 }
 0x58e   : > { %4493 = vmatprep.mubr.msk.f32.mxu0 %vm293_vm0, %v5224_v9  ;;  %4500 = vmatprep.mubr.msk.f32.mxu1 %vm293_vm0, %v5227_v10 }
 0x58f   : > { %4730 = vmatprep.subr.msk.bf16.mxu0 %vm5249_vm8, %v6114_v19  ;;  %4734 = vmatprep.subr.msk.bf16.mxu1 %vm5231_vm5, %v6114_v19  ;;  %v1713_v53 = vsel %vm293_vm0, %v1711_v25, 0.0 }
 0x590   : > { %4494 = vmatmul.mubr.msk.f32.vlgmr.msra.gmra.mrb[16].mxu0 %vm293_vm0, %v5255_v17  ;;  %4501 = vmatmul.mubr.msk.f32.vlgmr.msra.gmra.mrb[16].mxu1 %vm293_vm0, %v5258_v18  ;;  %v1714_v56 = vadd.f32 %v1713_v53, %v1712_v23 }
 0x591   : > { %4732 = vmatpush3.bf16.msk.msra.mxu0 %vm5249_vm8, %v6114_v19  ;;  %4736 = vmatpush3.bf16.msk.msra.mxu1 %vm5231_vm5, %v6114_v19 }
 0x592   : > { %1011 = vadd.xlane.f32.xlu1 %v1010_v24 }
 0x596   : > { %1715 = vadd.xlane.f32.xlu1 %v1714_v56 }
 0x59a   : > { %2431 = vadd.xlane.f32.xlu1 %v2430_v41  ;;  %v5659_v41 = vpop.xlane.xlu1 %1739 }
 0x65f   : > { %v4481_v29 = vpop.f32.mrb[14].mxu0  ;;  %v4488_v43 = vpop.f32.mrb[14].mxu1 }
 0x660   : > { %v1578_v31 = vadd.f32 %v4481_v29, %v5302_v32  ;;  %v1653_v49 = vadd.f32 %v4488_v43, %v5305_v33  ;;  %v1572_v50 = vpop.f32.mrb[15].mxu0  ;;  %v1647_v61 = vpop.f32.mrb[15].mxu1 }
 0x661   : > { %v1573_v38 = vadd.f32 %v1572_v50, %v5302_v32  ;;  %v1648_v47 = vadd.f32 %v1647_v61, %v5305_v33  ;;  %v5681_v61 = vpop.xlane.xlu1 %2455 }
 0x662   : > { %v1657_v0 = vmin.f32 %v1578_v31, %v1653_v49 }
 0x663   : > { %v1656_v3 = vmin.f32 %v1573_v38, %v1648_v47  ;;  %v4495_v4 = vpop.f32.mrb[16].mxu0  ;;  %v4502_v12 = vpop.f32.mrb[16].mxu1 }
 0x664   : > { %v1659_v15 = vmin.f32 %v1499_v52, %v1657_v0  ;;  %v1895_v24 = vadd.f32 %v4502_v12, %v5278_v20  ;;  %v1814_v26 = vpop.f32.mrb[17].mxu0  ;;  %v1889_v25 = vpop.f32.mrb[17].mxu1 }
 0x665   : > { %v1658_v23 = vmin.f32 %v1498_v5, %v1656_v3  ;;  %v1815_v53 = vadd.f32 %v1814_v26, %v5283_v21  ;;  %v1012_v47 = vpop.xlane.xlu1 %1011 }
 0x666   : > { %v1899_v56 = vmin.f32 %v4495_v4, %v1895_v24  ;;  %v1661_v35 = vsub.f32 %v5399_v58, %v1659_v15  ;;  %v1025_v4 = vrot.slane %v1024_v63, 4  ;;  %v1013_v12 = vrot.slane %v1012_v47, 4 }
 0x667   : > { %v1898_v36 = vmin.f32 %v1815_v53, %v1889_v25  ;;  %v1660_v37 = vsub.f32 %v5396_v55, %v1658_v23 }
 0x668   : > { %v1683_v29 = vsel %vm293_vm0, %v1661_v35, 0.0  ;;  %v1669_v52 = vmul.f32 %v5520_v13, %v1661_v35  ;;  %v5669_v58 = vmin.f32 %v5443_v45, %v1899_v56  ;;  %v1026_v26 = vadd.f32 %v1025_v4, %v1024_v63 }
 0x669   : > { %v5664_v43 = vmin.f32 %v5440_v44, %v1898_v36  ;;  %v1682_v5 = vsel %vm293_vm0, %v1660_v37, 0.0  ;;  %v1668_v31 = vmul.f32 %v5530_v22, %v1660_v37  ;;  %v1000_v22 = vpop.xlane.xlu0 %999  ;;  %v1014_v25 = vadd.f32 %v1013_v12, %v1012_v47  ;;  %v5687_v63 = vpop.xlane.xlu1 %1715 }
 0x66a   : > { %v1684_v49 = vadd.f32 %v1683_v29, %v1682_v5  ;;  %v1671_v50 = vsel %vm293_vm0, %v1669_v52, 0.0  ;;  %v1001_v0 = vrot.slane %v1000_v22, 4  ;;  %v1027_v56 = vrot.slane %v1026_v26, 2 }
 0x66b   : > { %4507 = vmatprep.mubr.msk.f32.mxu0 %vm293_vm0, %v5664_v43  ;;  %4514 = vmatprep.mubr.msk.f32.mxu1 %vm293_vm0, %v5664_v43  ;;  %v1670_v55 = vsel %vm293_vm0, %v1668_v31, 0.0  ;;  %v1015_v35 = vrot.slane %v1014_v25, 2 }
 0x66c   : > { %4508 = vmatmul.mubr.msk.f32.vlgmr.msra.gmra.mrb[18].mxu0 %vm293_vm0, %v5669_v58  ;;  %4515 = vmatmul.mubr.msk.f32.vlgmr.msra.gmra.mrb[18].mxu1 %vm293_vm0, %v5669_v58  ;;  %v1672_v13 = vadd.f32 %v1671_v50, %v1670_v55  ;;  %v1002_v15 = vadd.f32 %v1001_v0, %v1000_v22  ;;  %v1028_v52 = vadd.f32 %v1027_v56, %v1026_v26 }
 0x66d   : > { %1685 = vadd.xlane.f32.xlu1 %v1684_v49  ;;  %4521 = vmatprep.mubr.msk.f32.mxu0 %vm293_vm0, %v5224_v9  ;;  %v298_v38 = vpop.xlane.xlu0 %297  ;;  %v1016_v29 = vadd.f32 %v1015_v35, %v1014_v25  ;;  %v5689_v47 = vpop.xlane.xlu1 %2431 }
 0x66e   : > { %1673 = vadd.xlane.f32.xlu0 %v1672_v13  ;;  %4528 = vmatprep.mubr.msk.f32.mxu1 %vm293_vm0, %v5227_v10  ;;  %v299_v3 = vrot.slane %v298_v38, 4  ;;  %v1003_v23 = vrot.slane %v1002_v15, 2  ;;  %v1029_v50 = vrot.slane %v1028_v52, 1 }
 0x66f   : > { %v1017_v49 = vrot.slane %v1016_v29, 1 }
 0x670   : > { %v300_v24 = vadd.f32 %v299_v3, %v298_v38  ;;  %v1004_v37 = vadd.f32 %v1003_v23, %v1002_v15  ;;  %v1030_v19 = vadd.f32 %v1029_v50, %v1028_v52 }
 0x671   : > { %v1018_v8 = vadd.f32 %v1017_v49, %v1016_v29  ;;  %v1698_v22 = vpop.xlane.xlu0 %1697 }
 0x672   : > { %v301_v53 = vrot.slane %v300_v24, 2  ;;  %v1005_v31 = vrot.slane %v1004_v37, 1  ;;  %v1699_v38 = vrot.slane %v1698_v22, 4 }
 0x674   : > { %v302_v36 = vadd.f32 %v301_v53, %v300_v24  ;;  %v1006_v13 = vadd.f32 %v1005_v31, %v1004_v37  ;;  %v1700_v3 = vadd.f32 %v1699_v38, %v1698_v22 }
 0x675   : > { %v5691_v0 = vpop.xlane.xlu0 %2413 }
 0x676   : > { %v303_v5 = vrot.slane %v302_v36, 1  ;;  %v1701_v24 = vrot.slane %v1700_v3, 2 }
 0x678   : > { %v304_v55 = vadd.f32 %v303_v5, %v302_v36 }
 0x67a   : > { %4817 = vpush %v304_v55 }
 0x67b   : > { %4823 = vpush %v1006_v13 }
 0x67c   : > { %4825 = vpush %v1018_v8  ;;  %v1702_v8 = vadd.f32 %v1701_v24, %v1700_v3 }
 0x67d   : > { %4827 = vpush %v1030_v19 }
 0x67e   : > { %v1703_v29 = vrot.slane %v1702_v8, 1 }
 0x680   : > { %v1704_v31 = vadd.f32 %v1703_v29, %v1702_v8 }
 0x6ab   : > { %s5937_s18 = spop %4817 }
 0x6ac   : > { %s5939_s16 = spop %4823 }
 0x6ad   : > { %s5941_s20 = spop %4825 }
 0x6ae   : > { %s5943_s23 = spop %4827 }
 0x6fa   : > { %v1686_v4 = vpop.xlane.xlu1 %1685 }
 0x6fb   : > { %v1687_v12 = vrot.slane %v1686_v4, 4  ;;  %v1674_v15 = vpop.xlane.xlu0 %1673 }
 0x6fc   : > { %v1675_v26 = vrot.slane %v1674_v15, 4 }
 0x6fd   : > { %v1688_v25 = vadd.f32 %v1687_v12, %v1686_v4 }
 0x6fe   : > { %v1676_v23 = vadd.f32 %v1675_v26, %v1674_v15 }
 0x6ff   : > { %v1689_v53 = vrot.slane %v1688_v25, 2 }
 0x700   : > { %v1677_v56 = vrot.slane %v1676_v23, 2 }
 0x701   : > { %v1690_v19 = vadd.f32 %v1689_v53, %v1688_v25 }
 0x702   : > { %v1678_v35 = vadd.f32 %v1677_v56, %v1676_v23  ;;  %v6125_v23 = vmov 1.0|1.0  }
 0x703   : > { %v1691_v36 = vrot.slane %v1690_v19, 1 }
 0x704   : > { %v1679_v37 = vrot.slane %v1678_v35, 1 }
 0x705   : > { %v1692_v5 = vadd.f32 %v1691_v36, %v1690_v19 }
 0x706   : > { %v1680_v52 = vadd.f32 %v1679_v37, %v1678_v35 }
 0x708   : > { %4829 = vpush %v1680_v52 }
 0x709   : > { %4831 = vpush %v1692_v5 }
 0x70a   : > { %4833 = vpush %v1704_v31 }
 0x739   : > { %s5945_s30 = spop %4829 }
 0x73a   : > { %s5947_s4 = spop %4831 }
 0x73b   : > { %s5949_s24 = spop %4833 }
 0x73f   : > { %v4509_v49 = vpop.f32.mrb[18].mxu0  ;;  %v4516_v50 = vpop.f32.mrb[18].mxu1 }
 0x740   : > { %v1980_v55 = vadd.f32 %v4509_v49, %v5302_v32  ;;  %v2055_v13 = vadd.f32 %v4516_v50, %v5305_v33  ;;  %v1974_v22 = vpop.f32.mrb[19].mxu0  ;;  %v2049_v38 = vpop.f32.mrb[19].mxu1 }
 0x741   : > { %v1975_v3 = vadd.f32 %v1974_v22, %v5302_v32  ;;  %v2050_v4 = vadd.f32 %v2049_v38, %v5305_v33 }
 0x742   : > { %v2059_v12 = vmin.f32 %v1980_v55, %v2055_v13 }
 0x743   : > { %v2058_v15 = vmin.f32 %v1975_v3, %v2050_v4 }
 0x744   : > { %v2061_v24 = vmin.f32 %v5669_v58, %v2059_v12 }
 0x745   : > { %v2060_v26 = vmin.f32 %v5664_v43, %v2058_v15  ;;  %v4753_v43 = vpack.c.bf16 %v5453_v28, %v5450_v27 }
 0x747   : > { %v4737_v25 = vpack.c.bf16 %v2061_v24, %v2060_v26 }
 0x749   : > { %4738 = vmatprep.subr.bf16.mxu0 %v4737_v25  ;;  %4742 = vmatprep.subr.bf16.mxu1 %v4737_v25 }
 0x74a   : > { %4740 = vmatpush3.bf16.msra.mxu0 %v4737_v25  ;;  %4744 = vmatpush3.bf16.msra.mxu1 %v4737_v25 }
 0x74b   : > { %4746 = vmatprep.subr.msk.bf16.mxu0 %vm5249_vm8, %v6125_v23  ;;  %4750 = vmatprep.subr.msk.bf16.mxu1 %vm5231_vm5, %v6125_v23 }
 0x74d   : > { %4522 = vmatmul.mubr.msk.f32.vlgmr.msra.gmra.mrb[20].mxu0 %vm293_vm0, %v5255_v17  ;;  %4529 = vmatmul.mubr.msk.f32.vlgmr.msra.gmra.mrb[20].mxu1 %vm293_vm0, %v5258_v18 }
 0x74e   : > { %4748 = vmatpush3.bf16.msk.msra.mxu0 %vm5249_vm8, %v6125_v23  ;;  %4752 = vmatpush3.bf16.msk.msra.mxu1 %vm5231_vm5, %v6125_v23 }
 0x74f   : > { %4754 = vmatprep.subr.bf16.mxu0 %v4753_v43  ;;  %4758 = vmatprep.subr.bf16.mxu1 %v4753_v43 }
 0x820   : > { %v4523_v58 = vpop.f32.mrb[20].mxu0  ;;  %v4530_v53 = vpop.f32.mrb[20].mxu1 }
 0x821   : > { %v2209_v56 = vadd.f32 %v4530_v53, %v5278_v20  ;;  %v2128_v8 = vpop.f32.mrb[21].mxu0  ;;  %v2203_v19 = vpop.f32.mrb[21].mxu1 }
 0x822   : > { %v2129_v35 = vadd.f32 %v2128_v8, %v5283_v21 }
 0x823   : > { %v2213_v36 = vmin.f32 %v4523_v58, %v2209_v56 }
 0x824   : > { %v2212_v37 = vmin.f32 %v2129_v35, %v2203_v19 }
 0x825   : > { %v2215_v52 = vmin.f32 %v2061_v24, %v2213_v36 }
 0x826   : > { %v2214_v29 = vmin.f32 %v2060_v26, %v2212_v37 }
 0x828   : > { %4535 = vmatprep.mubr.msk.f32.mxu0 %vm293_vm0, %v2214_v29  ;;  %4542 = vmatprep.mubr.msk.f32.mxu1 %vm293_vm0, %v2214_v29 }
 0x829   : > { %4536 = vmatmul.mubr.msk.f32.vlgmr.msra.gmra.mrb[22].mxu0 %vm293_vm0, %v2215_v52  ;;  %4543 = vmatmul.mubr.msk.f32.vlgmr.msra.gmra.mrb[22].mxu1 %vm293_vm0, %v2215_v52 }
 0x82a   : > { %4756 = vmatpush3.bf16.msra.mxu0 %v4753_v43  ;;  %4760 = vmatpush3.bf16.msra.mxu1 %v4753_v43 }
 0x82b   : > { %4549 = vmatprep.mubr.msk.f32.mxu0 %vm293_vm0, %v5224_v9  ;;  %4556 = vmatprep.mubr.msk.f32.mxu1 %vm293_vm0, %v5227_v10 }
 0x82c   : > { %4762 = vmatprep.subr.msk.bf16.mxu0 %vm5249_vm8, %v6125_v23  ;;  %4766 = vmatprep.subr.msk.bf16.mxu1 %vm5231_vm5, %v6125_v23 }
 0x82d   : > { %4550 = vmatmul.mubr.msk.f32.vlgmr.msra.gmra.mrb[24].mxu0 %vm293_vm0, %v5255_v17  ;;  %4557 = vmatmul.mubr.msk.f32.vlgmr.msra.gmra.mrb[24].mxu1 %vm293_vm0, %v5258_v18 }
 0x82e   : > { %4764 = vmatpush3.bf16.msk.msra.mxu0 %vm5249_vm8, %v6125_v23  ;;  %4768 = vmatpush3.bf16.msk.msra.mxu1 %vm5231_vm5, %v6125_v23 }
 0x8fc   : > { %v4537_v5 = vpop.f32.mrb[22].mxu0  ;;  %v4544_v31 = vpop.f32.mrb[22].mxu1 }
 0x8fd   : > { %v2294_v49 = vadd.f32 %v4537_v5, %v5302_v32  ;;  %v2369_v50 = vadd.f32 %v4544_v31, %v5305_v33  ;;  %v2288_v55 = vpop.f32.mrb[23].mxu0  ;;  %v2363_v13 = vpop.f32.mrb[23].mxu1 }
 0x8fe   : > { %v2289_v22 = vadd.f32 %v2288_v55, %v5302_v32  ;;  %v2364_v38 = vadd.f32 %v2363_v13, %v5305_v33  ;;  %v1717_v55 = vrot.slane %v5687_v63, 4 }
 0x8ff   : > { %v2373_v3 = vmin.f32 %v2294_v49, %v2369_v50  ;;  %v1741_v50 = vrot.slane %v5659_v41, 4 }
 0x900   : > { %v2372_v4 = vmin.f32 %v2289_v22, %v2364_v38  ;;  %v4551_v12 = vpop.f32.mrb[24].mxu0  ;;  %v4558_v15 = vpop.f32.mrb[24].mxu1  ;;  %v1718_v38 = vadd.f32 %v1717_v55, %v5687_v63 }
 0x901   : > { %v2375_v24 = vmin.f32 %v2215_v52, %v2373_v3  ;;  %v2611_v26 = vadd.f32 %v4558_v15, %v5278_v20  ;;  %v2530_v25 = vpop.f32.mrb[25].mxu0  ;;  %v2605_v43 = vpop.f32.mrb[25].mxu1  ;;  %v1742_v22 = vadd.f32 %v1741_v50, %v5659_v41 }
 0x902   : > { %v2374_v58 = vmin.f32 %v2214_v29, %v2372_v4  ;;  %v2531_v53 = vadd.f32 %v2530_v25, %v5283_v21 }
 0x903   : > { %v2615_v56 = vmin.f32 %v4551_v12, %v2611_v26  ;;  %v2377_v8 = vsub.f32 %v5443_v45, %v2375_v24  ;;  %v1743_v4 = vrot.slane %v1742_v22, 2  ;;  %v1719_v12 = vrot.slane %v1718_v38, 2 }
 0x904   : > { %v2614_v19 = vmin.f32 %v2531_v53, %v2605_v43  ;;  %v2376_v35 = vsub.f32 %v5440_v44, %v2374_v58 }
 0x905   : > { %v2399_v36 = vsel %vm293_vm0, %v2377_v8, 0.0  ;;  %v2385_v37 = vmul.f32 %v5523_v14, %v2377_v8  ;;  %v5759_v29 = vmin.f32 %v5453_v28, %v2615_v56  ;;  %v1720_v15 = vadd.f32 %v1719_v12, %v1718_v38 }
 0x906   : > { %v5754_v5 = vmin.f32 %v5450_v27, %v2614_v19  ;;  %v2398_v52 = vsel %vm293_vm0, %v2376_v35, 0.0  ;;  %v2384_v31 = vmul.f32 %v5535_v30, %v2376_v35  ;;  %v1729_v30 = vrot.slane %v5649_v62, 4 }
 0x907   : > { %v2400_v49 = vadd.f32 %v2399_v36, %v2398_v52  ;;  %v2387_v45 = vsel %vm293_vm0, %v2385_v37, 0.0  ;;  %v1744_v26 = vadd.f32 %v1743_v4, %v1742_v22  ;;  %v1721_v25 = vrot.slane %v1720_v15, 1 }
 0x908   : > { %4563 = vmatprep.mubr.msk.f32.mxu0 %vm293_vm0, %v5754_v5  ;;  %4570 = vmatprep.mubr.msk.f32.mxu1 %vm293_vm0, %v5754_v5  ;;  %v2386_v44 = vsel %vm293_vm0, %v2384_v31, 0.0  ;;  %v1730_v13 = vadd.f32 %v1729_v30, %v5649_v62  ;;  %v2415_v62 = vrot.slane %v5691_v0, 4 }
 0x909   : > { %4564 = vmatmul.mubr.msk.f32.vlgmr.msra.gmra.mrb[26].mxu0 %vm293_vm0, %v5759_v29  ;;  %4571 = vmatmul.mubr.msk.f32.vlgmr.msra.gmra.mrb[26].mxu1 %vm293_vm0, %v5759_v29  ;;  %v2388_v14 = vadd.f32 %v2387_v45, %v2386_v44  ;;  %v1745_v58 = vrot.slane %v1744_v26, 1  ;;  %v1722_v53 = vadd.f32 %v1721_v25, %v1720_v15 }
 0x90a   : > { %2401 = vadd.xlane.f32.xlu1 %v2400_v49  ;;  %4577 = vmatprep.mubr.msk.f32.mxu0 %vm293_vm0, %v5224_v9  ;;  %v1731_v3 = vrot.slane %v1730_v13, 2  ;;  %v2416_v41 = vadd.f32 %v2415_v62, %v5691_v0 }
 0x90b   : > { %2389 = vadd.xlane.f32.xlu0 %v2388_v14  ;;  %4584 = vmatprep.mubr.msk.f32.mxu1 %vm293_vm0, %v5227_v10  ;;  %v1746_v8 = vadd.f32 %v1745_v58, %v1744_v26  ;;  %4835 = vpush %v1722_v53 }
 0x90c   : > { %v1732_v24 = vadd.f32 %v1731_v3, %v1730_v13  ;;  %v2417_v36 = vrot.slane %v2416_v41, 2 }
 0x90e   : > { %v1733_v43 = vrot.slane %v1732_v24, 1  ;;  %v2418_v44 = vadd.f32 %v2417_v36, %v2416_v41 }
 0x910   : > { %v1734_v56 = vadd.f32 %v1733_v43, %v1732_v24  ;;  %v2419_v13 = vrot.slane %v2418_v44, 1 }
 0x912   : > { %4837 = vpush %v1734_v56  ;;  %v2420_v3 = vadd.f32 %v2419_v13, %v2418_v44 }
 0x913   : > { %4839 = vpush %v1746_v8 }
 0x93c   : > { %s4836_s12 = spop %4835 }
 0x943   : > { %s5951_s28 = spop %4837 }
 0x944   : > { %s5953_s5 = spop %4839 }
 0x997   : > { %v2402_v63 = vpop.xlane.xlu1 %2401 }
 0x998   : > { %v2403_v19 = vrot.slane %v2402_v63, 4  ;;  %v2390_v35 = vpop.xlane.xlu0 %2389 }
 0x999   : > { %v2391_v37 = vrot.slane %v2390_v35, 4 }
 0x99a   : > { %v2404_v52 = vadd.f32 %v2403_v19, %v2402_v63 }
 0x99b   : > { %v2392_v31 = vadd.f32 %v2391_v37, %v2390_v35 }
 0x99c   : > { %v2405_v49 = vrot.slane %v2404_v52, 2 }
 0x99d   : > { %v2393_v45 = vrot.slane %v2392_v31, 2 }
 0x99e   : > { %v2406_v14 = vadd.f32 %v2405_v49, %v2404_v52 }
 0x99f   : > { %v2394_v30 = vadd.f32 %v2393_v45, %v2392_v31 }
 0x9a0   : > { %v2407_v50 = vrot.slane %v2406_v14, 1 }
 0x9a1   : > { %v2395_v55 = vrot.slane %v2394_v30, 1 }
 0x9a2   : > { %v2408_v38 = vadd.f32 %v2407_v50, %v2406_v14 }
 0x9a3   : > { %v2396_v22 = vadd.f32 %v2395_v55, %v2394_v30 }
 0x9a5   : > { %4841 = vpush %v2396_v22  ;;  %v6126_v22 = vmov 0.0  }
 0x9a6   : > { %4843 = vpush %v2408_v38  ;;  %v4185_v38 = vsel %vm267_vm4, 1.0, %v6126_v22  ;;  %vm3873_vm4 = vcmp.eq.s32.totalorder %v5210_v1, 1 }
 0x9a7   : > { %4845 = vpush %v2420_v3  ;;  %vm3882_vm12 = vmand %vm3873_vm4, %vm3863_vm15 }
 0x9a8   : > { %vm3886_vm14 = vmand %vm3873_vm4, %vm3868_vm2 }
 0x9d6   : > { %s5955_s6 = spop %4841 }
 0x9d7   : > { %s5957_s7 = spop %4843 }
 0x9d8   : > { %s5959_s8 = spop %4845 }
 0x9dc   : > { %v4565_v0 = vpop.f32.mrb[26].mxu0  ;;  %v4572_v4 = vpop.f32.mrb[26].mxu1 }
 0x9dd   : > { %v2696_v12 = vadd.f32 %v4565_v0, %v5302_v32  ;;  %v2771_v15 = vadd.f32 %v4572_v4, %v5305_v33  ;;  %v2690_v24 = vpop.f32.mrb[27].mxu0  ;;  %v2765_v26 = vpop.f32.mrb[27].mxu1 }
 0x9de   : > { %v2691_v25 = vadd.f32 %v2690_v24, %v5302_v32  ;;  %v2766_v43 = vadd.f32 %v2765_v26, %v5305_v33 }
 0x9df   : > { %v2775_v58 = vmin.f32 %v2696_v12, %v2771_v15  ;;  %v4186_v12 = vsel %vm268_vm6, 1.0, %v6126_v22  ;;  %vm3874_vm6 = vmand %vm3873_vm4, %vm340_vm11 }
 0x9e0   : > { %v2774_v53 = vmin.f32 %v2691_v25, %v2766_v43 }
 0x9e1   : > { %v2777_v56 = vmin.f32 %v5759_v29, %v2775_v58  ;;  %v5811_v29 = vmul.f32 %v5393_v54, %v5387_v42 }
 0x9e2   : > { %v2776_v8 = vmin.f32 %v5754_v5, %v2774_v53  ;;  %v5807_v5 = vmul.f32 %v5391_v51, %v5385_v40 }
 0x9e4   : > { %v4769_v62 = vpack.c.bf16 %v2777_v56, %v2776_v8  ;;  %v4785_v41 = vpack.c.bf16 %v5811_v29, %v5807_v5  ;;  %v3142_v53 = vmul.f32 %v4185_v38, %v5807_v5 }
 0x9e6   : > { %4770 = vmatprep.subr.bf16.mxu0 %v4769_v62  ;;  %4774 = vmatprep.subr.bf16.mxu1 %v4769_v62 }
 0x9e7   : > { %4772 = vmatpush3.bf16.msra.mxu0 %v4769_v62  ;;  %4776 = vmatpush3.bf16.msra.mxu1 %v4769_v62 }
 0x9e8   : > { %4778 = vmatprep.subr.msk.bf16.mxu0 %vm5249_vm8, %v6125_v23  ;;  %4782 = vmatprep.subr.msk.bf16.mxu1 %vm5231_vm5, %v6125_v23 }
 0x9ea   : > { %4578 = vmatmul.mubr.msk.f32.vlgmr.msra.gmra.mrb[28].mxu0 %vm293_vm0, %v5255_v17  ;;  %4585 = vmatmul.mubr.msk.f32.vlgmr.msra.gmra.mrb[28].mxu1 %vm293_vm0, %v5258_v18 }
 0x9eb   : > { %4780 = vmatpush3.bf16.msk.msra.mxu0 %vm5249_vm8, %v6125_v23  ;;  %4784 = vmatpush3.bf16.msk.msra.mxu1 %vm5231_vm5, %v6125_v23 }
 0x9ec   : > { %4786 = vmatprep.subr.bf16.mxu0 %v4785_v41  ;;  %4790 = vmatprep.subr.bf16.mxu1 %v4785_v41 }
 0xabd   : > { %v4579_v63 = vpop.f32.mrb[28].mxu0  ;;  %v4586_v19 = vpop.f32.mrb[28].mxu1 }
 0xabe   : > { %v2925_v35 = vadd.f32 %v4586_v19, %v5278_v20  ;;  %v2844_v36 = vpop.f32.mrb[29].mxu0  ;;  %v2919_v37 = vpop.f32.mrb[29].mxu1 }
 0xabf   : > { %v2845_v52 = vadd.f32 %v2844_v36, %v5283_v21 }
 0xac0   : > { %v2929_v31 = vmin.f32 %v4579_v63, %v2925_v35 }
 0xac1   : > { %v2928_v40 = vmin.f32 %v2845_v52, %v2919_v37  ;;  %v3144_v37 = vsel %vm293_vm0, %v3142_v53, 0.0 }
 0xac2   : > { %v2931_v49 = vmin.f32 %v2777_v56, %v2929_v31 }
 0xac3   : > { %v2930_v51 = vmin.f32 %v2776_v8, %v2928_v40  ;;  %v3143_v8 = vmul.f32 %v4186_v12, %v5811_v29 }
 0xac5   : > { %4591 = vmatprep.mubr.msk.f32.mxu0 %vm293_vm0, %v2930_v51  ;;  %4598 = vmatprep.mubr.msk.f32.mxu1 %vm293_vm0, %v2930_v51 }
 0xac6   : > { %4592 = vmatmul.mubr.msk.f32.vlgmr.msra.gmra.mrb[30].mxu0 %vm293_vm0, %v2931_v49  ;;  %4599 = vmatmul.mubr.msk.f32.vlgmr.msra.gmra.mrb[30].mxu1 %vm293_vm0, %v2931_v49 }
 0xac7   : > { %4788 = vmatpush3.bf16.msra.mxu0 %v4785_v41  ;;  %4792 = vmatpush3.bf16.msra.mxu1 %v4785_v41 }
 0xac8   : > { %4605 = vmatprep.mubr.msk.f32.mxu0 %vm293_vm0, %v5224_v9  ;;  %4612 = vmatprep.mubr.msk.f32.mxu1 %vm293_vm0, %v5227_v10 }
 0xac9   : > { %4794 = vmatprep.subr.msk.bf16.mxu0 %vm5249_vm8, %v6125_v23  ;;  %4798 = vmatprep.subr.msk.bf16.mxu1 %vm5231_vm5, %v6125_v23 }
 0xaca   : > { %4606 = vmatmul.mubr.msk.f32.vlgmr.msra.gmra.mrb[32].mxu0 %vm293_vm0, %v5255_v17  ;;  %4613 = vmatmul.mubr.msk.f32.vlgmr.msra.gmra.mrb[32].mxu1 %vm293_vm0, %v5258_v18 }
 0xacb   : > { %4796 = vmatpush3.bf16.msk.msra.mxu0 %vm5249_vm8, %v6125_v23  ;;  %4800 = vmatpush3.bf16.msk.msra.mxu1 %vm5231_vm5, %v6125_v23 }
 0xb99   : > { %v4593_v42 = vpop.f32.mrb[30].mxu0  ;;  %v4600_v54 = vpop.f32.mrb[30].mxu1 }
 0xb9a   : > { %v3010_v45 = vadd.f32 %v4593_v42, %v5302_v32  ;;  %v3085_v44 = vadd.f32 %v4600_v54, %v5305_v33  ;;  %v3004_v14 = vpop.f32.mrb[31].mxu0  ;;  %v3079_v30 = vpop.f32.mrb[31].mxu1  ;;  %v3156_v42 = vsel %vm293_vm0, %v5807_v5, 0.0  ;;  %v3157_v54 = vsel %vm293_vm0, %v5811_v29, 0.0 }
 0xb9b   : > { %v3005_v50 = vadd.f32 %v3004_v14, %v5302_v32  ;;  %v3080_v55 = vadd.f32 %v3079_v30, %v5305_v33  ;;  %v2457_v14 = vrot.slane %v5681_v61, 4  ;;  %v2433_v30 = vrot.slane %v5689_v47, 4 }
 0xb9c   : > { %v3089_v13 = vmin.f32 %v3010_v45, %v3085_v44  ;;  %v3158_v44 = vadd.f32 %v3157_v54, %v3156_v42 }
 0xb9d   : > { %v3088_v3 = vmin.f32 %v3005_v50, %v3080_v55  ;;  %v4607_v0 = vpop.f32.mrb[32].mxu0  ;;  %v4614_v4 = vpop.f32.mrb[32].mxu1  ;;  %v2458_v50 = vadd.f32 %v2457_v14, %v5681_v61  ;;  %v2434_v55 = vadd.f32 %v2433_v30, %v5689_v47 }
 0xb9e   : > { %v3091_v15 = vmin.f32 %v2931_v49, %v3089_v13  ;;  %v3327_v24 = vadd.f32 %v4614_v4, %v5278_v20  ;;  %v3246_v26 = vpop.f32.mrb[33].mxu0  ;;  %v3321_v25 = vpop.f32.mrb[33].mxu1  ;;  %v3169_v49 = vsel %vm293_vm0, %v4186_v12, 0.0 }
 0xb9f   : > { %v3090_v43 = vmin.f32 %v2930_v51, %v3088_v3  ;;  %v3247_v58 = vadd.f32 %v3246_v26, %v5283_v21  ;;  %v3168_v51 = vsel %vm293_vm0, %v4185_v38, 0.0  ;;  %v2459_v22 = vrot.slane %v2458_v50, 2 }
 0xba0   : > { %v3331_v56 = vmin.f32 %v4607_v0, %v3327_v24  ;;  %v3093_v6 = vsub.f32 %v5453_v28, %v3091_v15  ;;  %v3170_v45 = vadd.f32 %v3169_v49, %v3168_v51  ;;  %v2435_v38 = vrot.slane %v2434_v55, 2 }
 0xba1   : > { %v3330_v62 = vmin.f32 %v3247_v58, %v3321_v25  ;;  %v3092_v41 = vsub.f32 %v5450_v27, %v3090_v43  ;;  %v3145_v27 = vsel %vm293_vm0, %v3143_v8, 0.0  ;;  %v2460_v0 = vadd.f32 %v2459_v22, %v2458_v50 }
 0xba2   : > { %v3115_v7 = vsel %vm293_vm0, %v3093_v6, 0.0  ;;  %v3101_v63 = vmul.f32 %v5540_v34, %v3093_v6  ;;  %v5866_v28 = vmin.f32 %v5811_v29, %v3331_v56  ;;  %v3146_v40 = vadd.f32 %v3145_v27, %v3144_v37 }
 0xba3   : > { %v5860_v19 = vmin.f32 %v5807_v5, %v3330_v62  ;;  %v3114_v35 = vsel %vm293_vm0, %v3092_v41, 0.0  ;;  %v3100_v36 = vmul.f32 %v5547_v57, %v3092_v41  ;;  %v2436_v3 = vadd.f32 %v2435_v38, %v2434_v55 }
 0xba4   : > { %v3116_v52 = vadd.f32 %v3115_v7, %v3114_v35  ;;  %v3103_v31 = vsel %vm293_vm0, %v3101_v63, 0.0  ;;  %v2461_v15 = vrot.slane %v2460_v0, 1 }
 0xba5   : > { %4619 = vmatprep.mubr.msk.f32.mxu0 %vm293_vm0, %v5860_v19  ;;  %4626 = vmatprep.mubr.msk.f32.mxu1 %vm293_vm0, %v5860_v19  ;;  %v3102_v34 = vsel %vm293_vm0, %v3100_v36, 0.0  ;;  %v2437_v4 = vrot.slane %v2436_v3, 1 }
 0xba6   : > { %4620 = vmatmul.mubr.msk.f32.vlgmr.msra.gmra.mrb[34].mxu0 %vm293_vm0, %v5866_v28  ;;  %4627 = vmatmul.mubr.msk.f32.vlgmr.msra.gmra.mrb[34].mxu1 %vm293_vm0, %v5866_v28  ;;  %v3104_v57 = vadd.f32 %v3103_v31, %v3102_v34  ;;  %v2462_v25 = vadd.f32 %v2461_v15, %v2460_v0 }
 0xba7   : > { %3117 = vadd.xlane.f32.xlu1 %v3116_v52  ;;  %4633 = vmatprep.mubr.msk.f32.mxu0 %vm293_vm0, %v5224_v9  ;;  %v2445_v9 = vrot.slane %v5656_v48, 4  ;;  %v2438_v24 = vadd.f32 %v2437_v4, %v2436_v3 }
 0xba8   : > { %3105 = vadd.xlane.f32.xlu0 %v3104_v57  ;;  %4640 = vmatprep.mubr.msk.f32.mxu1 %vm293_vm0, %v5227_v10 }
 0xba9   : > { %v2446_v10 = vadd.f32 %v2445_v9, %v5656_v48  ;;  %4847 = vpush %v2438_v24 }
 0xbab   : > { %3147 = vadd.xlane.f32.xlu1 %v3146_v40  ;;  %v2447_v13 = vrot.slane %v2446_v10, 2 }
 0xbac   : > { %3129 = vadd.xlane.f32.xlu0 %v5556_v59 }
 0xbad   : > { %v2448_v59 = vadd.f32 %v2447_v13, %v2446_v10 }
 0xbaf   : > { %3171 = vadd.xlane.f32.xlu1 %v3170_v45  ;;  %v2449_v12 = vrot.slane %v2448_v59, 1 }
 0xbb0   : > { %3159 = vadd.xlane.f32.xlu0 %v3158_v44 }
 0xbb1   : > { %v2450_v26 = vadd.f32 %v2449_v12, %v2448_v59 }
 0xbb3   : > { %4849 = vpush %v2450_v26 }
 0xbb4   : > { %4851 = vpush %v2462_v25 }
 0xbda   : > { %s5961_s9 = spop %4847 }
 0xbe4   : > { %s5963_s15 = spop %4849 }
 0xbe5   : > { %s5965_s21 = spop %4851 }
 0xc34   : > { %v3118_v48 = vpop.xlane.xlu1 %3117 }
 0xc35   : > { %v3119_v43 = vrot.slane %v3118_v48, 4  ;;  %v3106_v61 = vpop.xlane.xlu0 %3105 }
 0xc36   : > { %v3107_v58 = vrot.slane %v3106_v61, 4 }
 0xc37   : > { %v3120_v47 = vadd.f32 %v3119_v43, %v3118_v48 }
 0xc38   : > { %v3108_v53 = vadd.f32 %v3107_v58, %v3106_v61  ;;  %v3148_v56 = vpop.xlane.xlu1 %3147 }
 0xc39   : > { %v3121_v6 = vrot.slane %v3120_v47, 2  ;;  %v3149_v8 = vrot.slane %v3148_v56, 4  ;;  %v3130_v62 = vpop.xlane.xlu0 %3129 }
 0xc3a   : > { %v3109_v41 = vrot.slane %v3108_v53, 2  ;;  %v3131_v7 = vrot.slane %v3130_v62, 4 }
 0xc3b   : > { %v3150_v63 = vadd.f32 %v3149_v8, %v3148_v56  ;;  %v3122_v35 = vadd.f32 %v3121_v6, %v3120_v47 }
 0xc3c   : > { %v3132_v36 = vadd.f32 %v3131_v7, %v3130_v62  ;;  %v3110_v37 = vadd.f32 %v3109_v41, %v3108_v53  ;;  %v3172_v52 = vpop.xlane.xlu1 %3171 }
 0xc3d   : > { %v3151_v31 = vrot.slane %v3150_v63, 2  ;;  %v3160_v27 = vpop.xlane.xlu0 %3159  ;;  %v3123_v34 = vrot.slane %v3122_v35, 1  ;;  %v3173_v57 = vrot.slane %v3172_v52, 4 }
 0xc3e   : > { %v3133_v40 = vrot.slane %v3132_v36, 2  ;;  %v3161_v51 = vrot.slane %v3160_v27, 4  ;;  %v3111_v49 = vrot.slane %v3110_v37, 1 }
 0xc3f   : > { %v3152_v42 = vadd.f32 %v3151_v31, %v3150_v63  ;;  %v3174_v54 = vadd.f32 %v3173_v57, %v3172_v52  ;;  %v3124_v14 = vadd.f32 %v3123_v34, %v3122_v35 }
 0xc40   : > { %v3162_v45 = vadd.f32 %v3161_v51, %v3160_v27  ;;  %v3112_v44 = vadd.f32 %v3111_v49, %v3110_v37  ;;  %v3134_v9 = vadd.f32 %v3133_v40, %v3132_v36 }
 0xc41   : > { %v3153_v30 = vrot.slane %v3152_v42, 1  ;;  %v3175_v10 = vrot.slane %v3174_v54, 2 }
 0xc42   : > { %v3163_v50 = vrot.slane %v3162_v45, 2  ;;  %4853 = vpush %v3112_v44  ;;  %v3135_v55 = vrot.slane %v3134_v9, 1 }
 0xc43   : > { %4855 = vpush %v3124_v14  ;;  %v3154_v13 = vadd.f32 %v3153_v30, %v3152_v42  ;;  %v3176_v22 = vadd.f32 %v3175_v10, %v3174_v54 }
 0xc44   : > { %v3136_v38 = vadd.f32 %v3135_v55, %v3134_v9  ;;  %v3164_v3 = vadd.f32 %v3163_v50, %v3162_v45  ;;  %v3855_v50 = vstv %s5939_s16 }
 0xc45   : > { %v3177_v59 = vrot.slane %v3176_v22, 1 }
 0xc46   : > { %4857 = vpush %v3136_v38  ;;  %v3165_v0 = vrot.slane %v3164_v3, 1 }
 0xc47   : > { %4859 = vpush %v3154_v13  ;;  %v3178_v4 = vadd.f32 %v3177_v59, %v3176_v22  ;;  %v3860_v13 = vstv %s4836_s12 }
 0xc48   : > { %v3166_v12 = vadd.f32 %v3165_v0, %v3164_v3 }
 0xc4a   : > { %4861 = vpush %v3166_v12 }
 0xc4b   : > { %4863 = vpush %v3178_v4 }
 0xc73   : > { %s5977_s22 = spop %4853 }
 0xc74   : > { %s5979_s25 = spop %4855 }
 0xc77   : > { %s5982_s29 = spop %4857 }
 0xc78   : > { %s4860_s3 = spop %4859 }
 0xc79   : > { %v4621_v15 = vpop.f32.mrb[34].mxu0  ;;  %v4628_v24 = vpop.f32.mrb[34].mxu1 }
 0xc7a   : > { %v3412_v26 = vadd.f32 %v4621_v15, %v5302_v32  ;;  %v3487_v25 = vadd.f32 %v4628_v24, %v5305_v33  ;;  %v3406_v48 = vpop.f32.mrb[35].mxu0  ;;  %v3481_v43 = vpop.f32.mrb[35].mxu1  ;;  %v3865_v24 = vstv %s5961_s9 }
 0xc7b   : > { %v3407_v61 = vadd.f32 %v3406_v48, %v5302_v32  ;;  %v3482_v58 = vadd.f32 %v3481_v43, %v5305_v33  ;;  %s4862_s19 = spop %4861 }
 0xc7c   : > { %v3491_v47 = vmin.f32 %v3412_v26, %v3487_v25  ;;  %s4864_s27 = spop %4863 }
 0xc7d   : > { %v3490_v53 = vmin.f32 %v3407_v61, %v3482_v58  ;;  %v3866_v58 = vsel %vm3864_vm1, %v3865_v24, 0.0  ;;  %vm3907_vm1 = vcmp.eq.s32.totalorder %v5210_v1, 3  ;;  %v3947_v24 = vstv %s5959_s8 }
 0xc7e   : > { %v3493_v56 = vmin.f32 %v5866_v28, %v3491_v47 }
 0xc7f   : > { %v3492_v6 = vmin.f32 %v5860_v19, %v3490_v53  ;;  %v3870_v53 = vstv %s4860_s3 }
 0xc81   : > { %v4801_v8 = vpack.c.bf16 %v3493_v56, %v3492_v6 }
 0xc83   : > { %4802 = vmatprep.subr.bf16.mxu0 %v4801_v8  ;;  %4806 = vmatprep.subr.bf16.mxu1 %v4801_v8 }
 0xc84   : > { %4804 = vmatpush3.bf16.msra.mxu0 %v4801_v8  ;;  %4808 = vmatpush3.bf16.msra.mxu1 %v4801_v8 }
 0xc85   : > { %4810 = vmatprep.subr.msk.bf16.mxu0 %vm5249_vm8, %v6125_v23  ;;  %4814 = vmatprep.subr.msk.bf16.mxu1 %vm5231_vm5, %v6125_v23 }
 0xc87   : > { %4634 = vmatmul.mubr.msk.f32.vlgmr.msra.gmra.mrb[36].mxu0 %vm293_vm0, %v5255_v17  ;;  %4641 = vmatmul.mubr.msk.f32.vlgmr.msra.gmra.mrb[36].mxu1 %vm293_vm0, %v5258_v18 }
 0xc88   : > { %4812 = vmatpush3.bf16.msk.msra.mxu0 %vm5249_vm8, %v6125_v23  ;;  %4816 = vmatpush3.bf16.msk.msra.mxu1 %vm5231_vm5, %v6125_v23  ;;  %vm3858_vm5 = vcmp.eq.s32.totalorder %v5212_v2, 1 }
 0xc89   : > { %vm3859_vm8 = vmand %vm332_vm10, %vm3858_vm5 }
 0xc8a   : > { %v3861_v12 = vsel %vm3859_vm8, %v3860_v13, 0.0  ;;  %vm3895_vm13 = vmand %vm3890_vm7, %vm3858_vm5  ;;  %v3934_v13 = vstv %s5979_s25 }
 0xc8b   : > { %vm3903_vm8 = vmand %vm3890_vm7, %vm3868_vm2 }
 0xd5a   : > { %v4635_v19 = vpop.f32.mrb[36].mxu0  ;;  %v4642_v28 = vpop.f32.mrb[36].mxu1 }
 0xd5b   : > { %v3641_v62 = vadd.f32 %v4642_v28, %v5278_v20  ;;  %v3560_v41 = vpop.f32.mrb[37].mxu0  ;;  %v3635_v7 = vpop.f32.mrb[37].mxu1  ;;  %v3875_v28 = vstv %s5941_s20 }
 0xd5c   : > { %v3561_v63 = vadd.f32 %v3560_v41, %v5283_v21  ;;  %v3876_v41 = vsel %vm3874_vm6, %v3875_v28, 0.0  ;;  %vm3916_vm6 = vmand %vm3907_vm1, %vm3863_vm15 }
 0xd5d   : > { %v3645_v17 = vmin.f32 %v4635_v19, %v3641_v62  ;;  %v3871_v19 = vsel %vm3869_vm3, %v3870_v53, 0.0  ;;  %vm3908_vm3 = vmand %vm3907_vm1, %vm340_vm11 }
 0xd5e   : > { %v3644_v35 = vmin.f32 %v3561_v63, %v3635_v7  ;;  %v3879_v7 = vstv %s5951_s28 }
 0xd5f   : > { %v3647_v18 = vmin.f32 %v3493_v56, %v3645_v17 }
 0xd60   : > { %v3646_v36 = vmin.f32 %v3492_v6, %v3644_v35  ;;  %v3883_v35 = vstv %s5963_s15 }
 0xd62   : > { %4647 = vmatprep.mubr.msk.f32.mxu0 %vm293_vm0, %v3646_v36  ;;  %4654 = vmatprep.mubr.msk.f32.mxu1 %vm293_vm0, %v3646_v36 }
 0xd63   : > { %4648 = vmatmul.mubr.msk.f32.vlgmr.msra.gmra.mrb[38].mxu0 %vm293_vm0, %v3647_v18  ;;  %4655 = vmatmul.mubr.msk.f32.vlgmr.msra.gmra.mrb[38].mxu1 %vm293_vm0, %v3647_v18 }
 0xe36   : > { %v4649_v11 = vpop.f32.mrb[38].mxu0  ;;  %v4656_v16 = vpop.f32.mrb[38].mxu1 }
 0xe37   : > { %v3726_v20 = vadd.f32 %v4649_v11, %v5302_v32  ;;  %v3801_v23 = vadd.f32 %v4656_v16, %v5305_v33  ;;  %v3720_v37 = vpop.f32.mrb[39].mxu0  ;;  %v3795_v21 = vpop.f32.mrb[39].mxu1  ;;  %v3887_v11 = vstv %s4862_s19 }
 0xe38   : > { %v3721_v52 = vadd.f32 %v3720_v37, %v5302_v32  ;;  %v3796_v31 = vadd.f32 %v3795_v21, %v5305_v33 }
 0xe39   : > { %v3805_v27 = vmin.f32 %v3726_v20, %v3801_v23  ;;  %v3888_v20 = vsel %vm3886_vm14, %v3887_v11, 0.0  ;;  %v3892_v23 = vstv %s5943_s23  ;;  %s4064_s23 = sshll.u32 %s6132_s13, 3 }
 0xe3a   : > { %v3804_v34 = vmin.f32 %v3721_v52, %v3796_v31  ;;  %v3893_v21 = vsel %vm3891_vm9, %v3892_v23, 0.0  ;;  %v3896_v52 = vstv %s5953_s5 }
 0xe3b   : > { %v3807_v57 = vmin.f32 %v3647_v18, %v3805_v27  ;;  %v3884_v18 = vsel %vm3882_vm12, %v3883_v35, 0.0  ;;  %v3897_v27 = vsel %vm3895_vm13, %v3896_v52, 0.0  ;;  %vm3920_vm12 = vmand %vm3907_vm1, %vm3868_vm2  ;;  %vm3941_vm13 = vcmp.eq.s32.totalorder %v5210_v1, 5 }
 0xe3c   : > { %v3806_v40 = vmin.f32 %v3646_v36, %v3804_v34  ;;  %v3900_v34 = vstv %s5965_s21 }
 0xe3d   : > { %v3809_v51 = vsub.f32 %v5811_v29, %v3807_v57 }
 0xe3e   : > { %v3808_v49 = vsub.f32 %v5807_v5, %v3806_v40 }
 0xe3f   : > { %v3831_v42 = vsel %vm293_vm0, %v3809_v51, 0.0  ;;  %v3817_v54 = vmul.f32 %v5554_v39, %v3809_v51  ;;  %v3904_v51 = vstv %s4864_s27 }
 0xe40   : > { %v3830_v45 = vsel %vm293_vm0, %v3808_v49, 0.0  ;;  %v3816_v44 = vmul.f32 %v5559_v60, %v3808_v49 }
 0xe41   : > { %v3832_v9 = vadd.f32 %v3831_v42, %v3830_v45  ;;  %v3819_v32 = vsel %vm293_vm0, %v3817_v54, 0.0  ;;  %v3905_v42 = vsel %vm3903_vm8, %v3904_v51, 0.0  ;;  %v3909_v54 = vstv %s5945_s30  ;;  %vm3942_vm8 = vmand %vm3941_vm13, %vm340_vm11 }
 0xe42   : > { %v3818_v33 = vsel %vm293_vm0, %v3816_v44, 0.0  ;;  %vm3854_vm0 = vmand %vm332_vm10, %vm340_vm11  ;;  %v3910_v44 = vsel %vm3908_vm3, %v3909_v54, 0.0 }
 0xe43   : > { %3833 = vadd.xlane.f32.xlu1 %v3832_v9  ;;  %v3820_v14 = vadd.f32 %v3819_v32, %v3818_v33  ;;  %v3856_v4 = vsel %vm3854_vm0, %v3855_v50, 0.0  ;;  %vm3878_vm10 = vmand %vm3873_vm4, %vm3858_vm5  ;;  %v3913_v9 = vstv %s5955_s6 }
 0xe44   : > { %v3862_v48 = vadd.f32 %v3861_v12, %v3856_v4  ;;  %v3880_v17 = vsel %vm3878_vm10, %v3879_v7, 0.0  ;;  %vm3899_vm0 = vmand %vm3890_vm7, %vm3863_vm15  ;;  %vm3924_vm10 = vcmp.eq.s32.totalorder %v5210_v1, 4  ;;  %v3943_v4 = vstv %s5949_s24  ;;  %s201_s24 = scalar_lea.vmem %s6110_s2, %s4064_s23 }
 0xe45   : > { %3821 = vadd.xlane.f32.xlu0 %v3820_v14  ;;  %v3901_v40 = vsel %vm3899_vm0, %v3900_v34, 0.0  ;;  %vm3912_vm4 = vmand %vm3907_vm1, %vm3858_vm5  ;;  %v3917_v14 = vstv %s5977_s22 }
 0xe46   : > { %v3867_v6 = vadd.f32 %v3866_v58, %v3862_v48  ;;  %v3914_v33 = vsel %vm3912_vm4, %v3913_v9, 0.0  ;;  %vm3925_vm14 = vmand %vm3924_vm10, %vm340_vm11  ;;  %v3951_v48 = vstv %s5982_s29  ;;  %vm3958_vm4 = vcmp.eq.s32.totalorder %v5210_v1, 6 }
 0xe47   : > { %vm3929_vm7 = vmand %vm3924_vm10, %vm3858_vm5 }
 0xe48   : > { %v3872_v62 = vadd.f32 %v3871_v19, %v3867_v6  ;;  %vm3933_vm9 = vmand %vm3924_vm10, %vm3863_vm15 }
 0xe49   : > { %3845 = vadd.xlane.f32.xlu0 %v5565_v46  ;;  %vm3937_vm0 = vmand %vm3924_vm10, %vm3868_vm2 }
 0xe4a   : > { %v3877_v63 = vadd.f32 %v3876_v41, %v3872_v62  ;;  %vm3946_vm1 = vmand %vm3941_vm13, %vm3858_vm5 }
 0xe4b   : > { %vm3950_vm3 = vmand %vm3941_vm13, %vm3863_vm15 }
 0xe4c   : > { %v3881_v36 = vadd.f32 %v3880_v17, %v3877_v63  ;;  %vm3954_vm5 = vmand %vm3941_vm13, %vm3868_vm2  ;;  %v3952_v53 = vsel %vm3950_vm3, %v3951_v48, 0.0 }
 0xe4e   : > { %v3885_v16 = vadd.f32 %v3884_v18, %v3881_v36 }
 0xe50   : > { %v3889_v37 = vadd.f32 %v3888_v20, %v3885_v16 }
 0xe52   : > { %v3894_v31 = vadd.f32 %v3893_v21, %v3889_v37 }
 0xe54   : > { %v3898_v57 = vadd.f32 %v3897_v27, %v3894_v31 }
 0xe56   : > { %v3902_v49 = vadd.f32 %v3901_v40, %v3898_v57 }
 0xe58   : > { %v3906_v45 = vadd.f32 %v3905_v42, %v3902_v49 }
 0xe5a   : > { %v3911_v32 = vadd.f32 %v3910_v44, %v3906_v45 }
 0xed0   : > { %v3834_v39 = vpop.xlane.xlu1 %3833 }
 0xed1   : > { %v3835_v60 = vrot.slane %v3834_v39, 4 }
 0xed2   : > { %v3822_v46 = vpop.xlane.xlu0 %3821 }
 0xed3   : > { %v3836_v5 = vadd.f32 %v3835_v60, %v3834_v39  ;;  %v3823_v29 = vrot.slane %v3822_v46, 4  ;;  %v3915_v39 = vadd.f32 %v3914_v33, %v3911_v32  ;;  %v3918_v60 = vsel %vm3916_vm6, %v3917_v14, 0.0  ;;  %vm3959_vm6 = vmand %vm3958_vm4, %vm340_vm11 }
 0xed5   : > { %v3837_v30 = vrot.slane %v3836_v5, 2  ;;  %v3824_v10 = vadd.f32 %v3823_v29, %v3822_v46  ;;  %v3926_v46 = vstv %s5947_s4 }
 0xed6   : > { %v3846_v55 = vpop.xlane.xlu0 %3845 }
 0xed7   : > { %v3838_v22 = vadd.f32 %v3837_v30, %v3836_v5  ;;  %v3825_v38 = vrot.slane %v3824_v10, 2  ;;  %v3847_v3 = vrot.slane %v3846_v55, 4  ;;  %v3919_v5 = vadd.f32 %v3918_v60, %v3915_v39 }
 0xed9   : > { %v3848_v59 = vadd.f32 %v3847_v3, %v3846_v55  ;;  %v3826_v0 = vadd.f32 %v3825_v38, %v3824_v10  ;;  %v3839_v15 = vrot.slane %v3838_v22, 1  ;;  %v3930_v10 = vstv %s5957_s7 }
 0xeda   : > { %v3927_v55 = vsel %vm3925_vm14, %v3926_v46, 0.0  ;;  %v3931_v38 = vsel %vm3929_vm7, %v3930_v10, 0.0 }
 0xedb   : > { %v3849_v26 = vrot.slane %v3848_v59, 2  ;;  %v3827_v25 = vrot.slane %v3826_v0, 1  ;;  %v3840_v47 = vadd.f32 %v3839_v15, %v3838_v22 }
 0xedd   : > { %v3850_v43 = vadd.f32 %v3849_v26, %v3848_v59  ;;  %v3828_v61 = vadd.f32 %v3827_v25, %v3826_v0  ;;  %v3935_v0 = vsel %vm3933_vm9, %v3934_v13, 0.0  ;;  %v3944_v25 = vsel %vm3942_vm8, %v3943_v4, 0.0 }
 0xedf   : > { %4865 = vpush %v3828_v61  ;;  %v3851_v56 = vrot.slane %v3850_v43, 1  ;;  %v3948_v61 = vsel %vm3946_vm1, %v3947_v24, 0.0 }
 0xee0   : > { %4867 = vpush %v3840_v47 }
 0xee1   : > { %v3852_v8 = vadd.f32 %v3851_v56, %v3850_v43  ;;  %v3960_v56 = vstv %s5937_s18 }
 0xee2   : > { %v3961_v28 = vsel %vm3959_vm6, %v3960_v56, 0.0 }
 0xee3   : > { %4869 = vpush %v3852_v8 }
 0xf10   : > { %s4866_s26 = spop %4865 }
 0xf11   : > { %v3921_v29 = vstv %s4866_s26  ;;  %s4868_s16 = spop %4867 }
 0xf12   : > { %v3922_v30 = vsel %vm3920_vm12, %v3921_v29, 0.0  ;;  %v3938_v59 = vstv %s4868_s16 }
 0xf13   : > { %v3923_v50 = vadd.f32 %v3922_v30, %v3919_v5  ;;  %v3939_v15 = vsel %vm3937_vm0, %v3938_v59, 0.0 }
 0xf14   : > { %s4870_s20 = spop %4869 }
 0xf15   : > { %v3928_v22 = vadd.f32 %v3927_v55, %v3923_v50  ;;  %v3955_v47 = vstv %s4870_s20 }
 0xf16   : > { %v3956_v8 = vsel %vm3954_vm5, %v3955_v47, 0.0 }
 0xf17   : > { %v3932_v3 = vadd.f32 %v3931_v38, %v3928_v22 }
 0xf19   : > { %v3936_v12 = vadd.f32 %v3935_v0, %v3932_v3 }
 0xf1b   : > { %v3940_v26 = vadd.f32 %v3939_v15, %v3936_v12 }
 0xf1d   : > { %v3945_v43 = vadd.f32 %v3944_v25, %v3940_v26 }
 0xf1f   : > { %v3949_v58 = vadd.f32 %v3948_v61, %v3945_v43 }
 0xf21   : > { %v3953_v6 = vadd.f32 %v3952_v53, %v3949_v58 }
 0xf23   : > { %v3957_v19 = vadd.f32 %v3956_v8, %v3953_v6 }
 0xf25   : > { %v3962_v62 = vadd.f32 %v3961_v28, %v3957_v19 }
 0xf27   : > { %3963 = vst [vmem:[%s201_s24] sm:$0xff] %v3962_v62 }
 0xf28 PF: > { %p15_p11 = scmp.ge.s32.totalorder %s5086_s14, 4   ;;  %s6127_s9 = smov %s5033_s10 }
 0xf29   : > { %s6128_s10 = smov %s5037_s11  ;;  %s6129_s11 = smov %s5096_s17 }
 0xf2a   : > { %s6130_s12 = smov %s5086_s14  ;;  %17 = sbr.rel (!%p15_p11) target bundleno = 5 (0x5), region = 84 }
 0xf31   :  { %3983 = vsyncpa [#allocation3], 1 }
 0xf32   :  { %3985 = vsyncpa [#allocation3 + $0x1], 1 }
 0xf33   :  { %3986 = vsyncpa [#allocation5], 1 }
 0xf34   :  { %3988 = vsyncpa [#allocation5 + $0x1], 1 }

</bundles_post_ra>
